<compile_context>
chip_gen: v5e
topology: v5e:2x2
jax: 0.10.0
libtpu: 0.0.40
codegen_flags: <defaults>
</compile_context>

<pallas_src>
import functools
import math

import jax
import jax.numpy as jnp
from jax.experimental import pallas as pl
from jax.experimental.pallas import tpu as pltpu


def _round_up(x, m):
    return (x + m - 1) // m * m


# --------------------------------------------------------------------------
# Kernel 1: tiled linear (+bias, optional ReLU)
# --------------------------------------------------------------------------
def _linear_kernel(x_ref, w_ref, b_ref, o_ref, *, activation):
    acc = jnp.dot(x_ref[...], w_ref[...], preferred_element_type=jnp.float32)
    acc = acc + b_ref[...]
    if activation == "relu":
        acc = jnp.maximum(acc, 0.0)
    o_ref[...] = acc.astype(o_ref.dtype)


def linear(x, w, b, activation=None, block_m=256):
    """y = x @ w + b, x:(M,K), w:(K,N), b:(N,) -> (M,N). Optional fused ReLU."""
    M, K = x.shape
    N = w.shape[1]

    # Lane-dense output: pad N up to a multiple of 128 (masked-store fix).
    n_pad = _round_up(N, 128)
    # Sublane-aligned M tiling; block_m=256 keeps 2x(lhs+out) tiles well under the
    # v7x 32 MiB scoped / 64 MiB physical VMEM budget even for K,N up to a few K.
    m8 = _round_up(M, 8)
    tm = min(_round_up(block_m, 8), m8)
    m_pad = _round_up(m8, tm)

    if m_pad != M:
        x = jnp.pad(x, ((0, m_pad - M), (0, 0)))
    if n_pad != N:
        w = jnp.pad(w, ((0, 0), (0, n_pad - N)))
        b = jnp.pad(b, (0, n_pad - N))
    b2 = b.reshape(1, n_pad)

    grid = (m_pad // tm,)
    bytes_accessed = 4 * (m_pad * K + K * n_pad + n_pad + m_pad * n_pad)
    out = pl.pallas_call(
        functools.partial(_linear_kernel, activation=activation),
        out_shape=jax.ShapeDtypeStruct((m_pad, n_pad), x.dtype),
        grid=grid,
        in_specs=[
            pl.BlockSpec((tm, K), lambda i: (i, 0)),       # lhs: streamed / double-buffered
            pl.BlockSpec((K, n_pad), lambda i: (0, 0)),    # weight: resident across grid
            pl.BlockSpec((1, n_pad), lambda i: (0, 0)),    # bias: resident
        ],
        out_specs=pl.BlockSpec((tm, n_pad), lambda i: (i, 0)),
        compiler_params=pltpu.CompilerParams(
            dimension_semantics=("parallel",)),
        cost_estimate=pl.CostEstimate(
            flops=2 * m_pad * K * n_pad,
            transcendentals=0,
            bytes_accessed=bytes_accessed),
    )(x, w, b2)
    return out[:M, :N]


# --------------------------------------------------------------------------
# Kernel 2: scaled dot-product attention, one (batch, head) per grid step
# --------------------------------------------------------------------------
def _attn_kernel(q_ref, k_ref, v_ref, o_ref, *, scale):
    q = q_ref[...]            # (Sq, Dh)
    k = k_ref[...]            # (Sk, Dh)
    v = v_ref[...]            # (Sk, Dh)
    s = jax.lax.dot_general(q, k, (((1,), (1,)), ((), ())),
                            preferred_element_type=jnp.float32) * scale
    m = jnp.max(s, axis=-1, keepdims=True)
    p = jnp.exp(s - m)
    l = jnp.sum(p, axis=-1, keepdims=True)
    o = jnp.dot(p, v, preferred_element_type=jnp.float32) / l
    o_ref[...] = o.astype(o_ref.dtype)


def scaled_dot_product_attention(q, k, v):
    """q:(BH,Sq,Dh), k/v:(BH,Sk,Dh) -> (BH,Sq,Dh). Softmax over keys, scale 1/sqrt(Dh)."""
    BH, Sq, Dh = q.shape
    Sk = k.shape[1]
    scale = 1.0 / math.sqrt(Dh)
    # Note: head_dim is tiny at toy shapes (lane-sparse); negligible vs the FFN matmuls.
    return pl.pallas_call(
        functools.partial(_attn_kernel, scale=scale),
        out_shape=jax.ShapeDtypeStruct((BH, Sq, Dh), q.dtype),
        grid=(BH,),
        in_specs=[
            pl.BlockSpec((None, Sq, Dh), lambda b: (b, 0, 0)),
            pl.BlockSpec((None, Sk, Dh), lambda b: (b, 0, 0)),
            pl.BlockSpec((None, Sk, Dh), lambda b: (b, 0, 0)),
        ],
        out_specs=pl.BlockSpec((None, Sq, Dh), lambda b: (b, 0, 0)),
        compiler_params=pltpu.CompilerParams(
            dimension_semantics=("parallel",)),
    )(q, k, v)


# --------------------------------------------------------------------------
# Kernel 3: fused residual-add + LayerNorm (post-norm Transformer block)
# --------------------------------------------------------------------------
def _add_ln_kernel(x_ref, r_ref, g_ref, b_ref, o_ref, *, eps):
    y = x_ref[...] + r_ref[...]
    mean = jnp.mean(y, axis=-1, keepdims=True)
    c = y - mean
    var = jnp.mean(c * c, axis=-1, keepdims=True)
    inv = jax.lax.rsqrt(var + eps)
    o_ref[...] = (c * inv * g_ref[...] + b_ref[...]).astype(o_ref.dtype)


def add_layer_norm(x, res, gamma, beta, eps=1e-5, block_m=256):
    """LayerNorm(x + res) over the last dim with affine (gamma, beta). x,res:(M,E)."""
    M, E = x.shape
    m8 = _round_up(M, 8)
    tm = min(_round_up(block_m, 8), m8)
    m_pad = _round_up(m8, tm)
    if m_pad != M:
        x = jnp.pad(x, ((0, m_pad - M), (0, 0)))
        res = jnp.pad(res, ((0, m_pad - M), (0, 0)))
    g2 = gamma.reshape(1, E)
    b2 = beta.reshape(1, E)
    out = pl.pallas_call(
        functools.partial(_add_ln_kernel, eps=eps),
        out_shape=jax.ShapeDtypeStruct((m_pad, E), x.dtype),
        grid=(m_pad // tm,),
        in_specs=[
            pl.BlockSpec((tm, E), lambda i: (i, 0)),
            pl.BlockSpec((tm, E), lambda i: (i, 0)),
            pl.BlockSpec((1, E), lambda i: (0, 0)),   # gamma resident
            pl.BlockSpec((1, E), lambda i: (0, 0)),   # beta resident
        ],
        out_specs=pl.BlockSpec((tm, E), lambda i: (i, 0)),
        compiler_params=pltpu.CompilerParams(
            dimension_semantics=("parallel",)),
    )(x, res, g2, b2)
    return out[:M]


# --------------------------------------------------------------------------
# Transformer building blocks (Pallas kernels + layout glue)
# --------------------------------------------------------------------------
def multi_head_attention(x_q, x_kv, p, nhead):
    """nn.MultiheadAttention (batch_first, no mask, eval mode)."""
    B, Sq, E = x_q.shape
    Sk = x_kv.shape[1]
    dh = E // nhead
    w_in = p["in_proj_weight"]   # (3E, E)
    b_in = p["in_proj_bias"]     # (3E,)

    if x_q is x_kv:
        # Self-attention: single packed, lane-dense QKV projection.
        qkv = linear(x_q.reshape(B * Sq, E), w_in.T, b_in)          # (B*Sq, 3E)
        q, k, v = jnp.split(qkv, 3, axis=-1)
    else:
        # Cross-attention: project Q from queries, packed KV from memory.
        q = linear(x_q.reshape(B * Sq, E), w_in[:E].T, b_in[:E])    # (B*Sq, E)
        kv = linear(x_kv.reshape(B * Sk, E), w_in[E:].T, b_in[E:])  # (B*Sk, 2E)
        k, v = jnp.split(kv, 2, axis=-1)

    q = q.reshape(B, Sq, nhead, dh).transpose(0, 2, 1, 3).reshape(B * nhead, Sq, dh)
    k = k.reshape(B, Sk, nhead, dh).transpose(0, 2, 1, 3).reshape(B * nhead, Sk, dh)
    v = v.reshape(B, Sk, nhead, dh).transpose(0, 2, 1, 3).reshape(B * nhead, Sk, dh)

    o = scaled_dot_product_attention(q, k, v)                       # (B*H, Sq, dh)
    o = o.reshape(B, nhead, Sq, dh).transpose(0, 2, 1, 3).reshape(B * Sq, E)
    o = linear(o, p["out_proj_weight"].T, p["out_proj_bias"])
    return o.reshape(B, Sq, E)


def encoder_layer(x, p, nhead):
    """Post-LN nn.TransformerEncoderLayer (activation=relu, eval mode)."""
    B, S, E = x.shape
    sa = multi_head_attention(x, x, p["self_attn"], nhead)
    x2 = add_layer_norm(x.reshape(B * S, E), sa.reshape(B * S, E),
                        p["norm1_weight"], p["norm1_bias"])
    h = linear(x2, p["linear1_weight"].T, p["linear1_bias"], activation="relu")
    h = linear(h, p["linear2_weight"].T, p["linear2_bias"])
    x3 = add_layer_norm(x2, h, p["norm2_weight"], p["norm2_bias"])
    return x3.reshape(B, S, E)


def decoder_layer(tgt, memory, p, nhead):
    """Post-LN nn.TransformerDecoderLayer (activation=relu, eval mode)."""
    B, St, E = tgt.shape
    sa = multi_head_attention(tgt, tgt, p["self_attn"], nhead)
    t = add_layer_norm(tgt.reshape(B * St, E), sa.reshape(B * St, E),
                       p["norm1_weight"], p["norm1_bias"]).reshape(B, St, E)
    ca = multi_head_attention(t, memory, p["multihead_attn"], nhead)
    t2 = add_layer_norm(t.reshape(B * St, E), ca.reshape(B * St, E),
                        p["norm2_weight"], p["norm2_bias"])
    h = linear(t2, p["linear1_weight"].T, p["linear1_bias"], activation="relu")
    h = linear(h, p["linear2_weight"].T, p["linear2_bias"])
    t3 = add_layer_norm(t2, h, p["norm3_weight"], p["norm3_bias"])
    return t3.reshape(B, St, E)


def general_prompt_encoder_decoder(x, params, *, nhead, prompt_layers, prompt_len):
    """Forward of GeneralPromptEncoderDecoder. x: (B, S, proj_hidd_dim)."""
    B = x.shape[0]
    mem = x
    for lp in params["encoder_layers"]:
        mem = encoder_layer(mem, lp, nhead)

    pe = params["prompt_embeddings"]                 # (1, L, E)
    L, E = pe.shape[1], pe.shape[2]
    tgt = jnp.broadcast_to(pe, (B, L, E))
    for lp in params["decoder_layers"]:
        tgt = decoder_layer(tgt, mem, lp, nhead)

    out = linear(tgt.reshape(B * L, E),
                 params["proj_weight"].T, params["proj_bias"])
    embed_dim = params["proj_weight"].shape[0]
    out = out.reshape(B, L, embed_dim)
    if prompt_layers > 1:
        return out.reshape(-1, prompt_layers, prompt_len, embed_dim)
    return out


# --------------------------------------------------------------------------
# Parameter construction (shapes per the PyTorch module, deterministic)
# --------------------------------------------------------------------------
def _attn_params(key, e):
    ks = jax.random.split(key, 4)
    return {
        "in_proj_weight": 0.02 * jax.random.normal(ks[0], (3 * e, e), jnp.float32),
        "in_proj_bias": 0.02 * jax.random.normal(ks[1], (3 * e,), jnp.float32),
        "out_proj_weight": 0.02 * jax.random.normal(ks[2], (e, e), jnp.float32),
        "out_proj_bias": 0.02 * jax.random.normal(ks[3], (e,), jnp.float32),
    }


def _ffn_ln_params(key, e, f, n_norms):
    ks = jax.random.split(key, 4 + 2 * n_norms)
    p = {
        "linear1_weight": 0.02 * jax.random.normal(ks[0], (f, e), jnp.float32),
        "linear1_bias": 0.02 * jax.random.normal(ks[1], (f,), jnp.float32),
        "linear2_weight": 0.02 * jax.random.normal(ks[2], (e, f), jnp.float32),
        "linear2_bias": 0.02 * jax.random.normal(ks[3], (e,), jnp.float32),
    }
    for n in range(n_norms):
        p[f"norm{n + 1}_weight"] = 1.0 + 0.02 * jax.random.normal(ks[4 + 2 * n], (e,), jnp.float32)
        p[f"norm{n + 1}_bias"] = 0.02 * jax.random.normal(ks[5 + 2 * n], (e,), jnp.float32)
    return p


def _enc_layer_params(key, e, f):
    k0, k1 = jax.random.split(key)
    p = {"self_attn": _attn_params(k0, e)}
    p.update(_ffn_ln_params(k1, e, f, n_norms=2))
    return p


def _dec_layer_params(key, e, f):
    k0, k1, k2 = jax.random.split(key, 3)
    p = {"self_attn": _attn_params(k0, e),
         "multihead_attn": _attn_params(k1, e)}
    p.update(_ffn_ln_params(k2, e, f, n_norms=3))
    return p


def init_params(key, *, embed_dim, proj_hidd_dim, promptL, promptLayers,
                layers, dim_feedforward):
    ks = jax.random.split(key, 2 * layers + 3)
    enc = [_enc_layer_params(ks[i], proj_hidd_dim, dim_feedforward) for i in range(layers)]
    dec = [_dec_layer_params(ks[layers + i], proj_hidd_dim, dim_feedforward) for i in range(layers)]
    return {
        "prompt_embeddings": 0.02 * jax.random.normal(
            ks[-3], (1, promptL * promptLayers, proj_hidd_dim), jnp.float32),
        "encoder_layers": enc,
        "decoder_layers": dec,
        "proj_weight": 0.02 * jax.random.normal(ks[-2], (embed_dim, proj_hidd_dim), jnp.float32),
        "proj_bias": 0.02 * jax.random.normal(ks[-1], (embed_dim,), jnp.float32),
    }


# --------------------------------------------------------------------------
# Pure-JAX reference (same math, highest-precision matmuls)
# --------------------------------------------------------------------------
_HI = jax.lax.Precision.HIGHEST


def _ref_linear(x, w, b):
    return jnp.matmul(x, w.T, precision=_HI) + b


def _ref_mha(xq, xkv, p, nhead):
    B, Sq, E = xq.shape
    Sk = xkv.shape[1]
    dh = E // nhead
    wq, wk, wv = jnp.split(p["in_proj_weight"], 3, axis=0)
    bq, bk, bv = jnp.split(p["in_proj_bias"], 3)
    q = _ref_linear(xq, wq, bq).reshape(B, Sq, nhead, dh).transpose(0, 2, 1, 3)
    k = _ref_linear(xkv, wk, bk).reshape(B, Sk, nhead, dh).transpose(0, 2, 1, 3)
    v = _ref_linear(xkv, wv, bv).reshape(B, Sk, nhead, dh).transpose(0, 2, 1, 3)
    s = jnp.einsum("bhqd,bhkd->bhqk", q, k, precision=_HI) / math.sqrt(dh)
    a = jax.nn.softmax(s, axis=-1)
    o = jnp.einsum("bhqk,bhkd->bhqd", a, v, precision=_HI)
    o = o.transpose(0, 2, 1, 3).reshape(B, Sq, E)
    return _ref_linear(o, p["out_proj_weight"], p["out_proj_bias"])


def _ref_add_ln(x, r, g, b, eps=1e-5):
    y = x + r
    m = jnp.mean(y, axis=-1, keepdims=True)
    v = jnp.mean((y - m) ** 2, axis=-1, keepdims=True)
    return (y - m) * jax.lax.rsqrt(v + eps) * g + b


def _ref_encoder_layer(x, p, nhead):
    x = _ref_add_ln(x, _ref_mha(x, x, p["self_attn"], nhead),
                    p["norm1_weight"], p["norm1_bias"])
    h = jnp.maximum(_ref_linear(x, p["linear1_weight"], p["linear1_bias"]), 0.0)
    h = _ref_linear(h, p["linear2_weight"], p["linear2_bias"])
    return _ref_add_ln(x, h, p["norm2_weight"], p["norm2_bias"])


def _ref_decoder_layer(t, mem, p, nhead):
    t = _ref_add_ln(t, _ref_mha(t, t, p["self_attn"], nhead),
                    p["norm1_weight"], p["norm1_bias"])
    t = _ref_add_ln(t, _ref_mha(t, mem, p["multihead_attn"], nhead),
                    p["norm2_weight"], p["norm2_bias"])
    h = jnp.maximum(_ref_linear(t, p["linear1_weight"], p["linear1_bias"]), 0.0)
    h = _ref_linear(h, p["linear2_weight"], p["linear2_bias"])
    return _ref_add_ln(t, h, p["norm3_weight"], p["norm3_bias"])


def reference_forward(x, params, *, nhead, prompt_layers, prompt_len):
    B = x.shape[0]
    mem = x
    for lp in params["encoder_layers"]:
        mem = _ref_encoder_layer(mem, lp, nhead)
    pe = params["prompt_embeddings"]
    L, E = pe.shape[1], pe.shape[2]
    tgt = jnp.broadcast_to(pe, (B, L, E))
    for lp in params["decoder_layers"]:
        tgt = _ref_decoder_layer(tgt, mem, lp, nhead)
    out = _ref_linear(tgt, params["proj_weight"], params["proj_bias"])
    embed_dim = params["proj_weight"].shape[0]
    if prompt_layers > 1:
        return out.reshape(-1, prompt_layers, prompt_len, embed_dim)
    return out


# --------------------------------------------------------------------------
if __name__ == "__main__":
    # Small config consistent with the module's forward.
    B, SRC_LEN = 2, 8
    EMBED_DIM = 32            # final projection output dim
    PROJ_HIDD_DIM = 32        # d_model of encoder/decoder
    PROMPT_L = 4
    PROMPT_LAYERS = 2
    NHEAD = 8
    LAYERS = 1
    DIM_FEEDFORWARD = 2048    # nn.TransformerEncoderLayer default

    key = jax.random.PRNGKey(0)
    kx, kp = jax.random.split(key)
    x = jax.random.normal(kx, (B, SRC_LEN, PROJ_HIDD_DIM), dtype=jnp.float32)
    params = init_params(kp, embed_dim=EMBED_DIM, proj_hidd_dim=PROJ_HIDD_DIM,
                         promptL=PROMPT_L, promptLayers=PROMPT_LAYERS,
                         layers=LAYERS, dim_feedforward=DIM_FEEDFORWARD)

    fwd = jax.jit(functools.partial(
        general_prompt_encoder_decoder,
        nhead=NHEAD, prompt_layers=PROMPT_LAYERS, prompt_len=PROMPT_L))
    out = jax.block_until_ready(fwd(x, params))

    ref = jax.block_until_ready(reference_forward(
        x, params, nhead=NHEAD, prompt_layers=PROMPT_LAYERS, prompt_len=PROMPT_L))

    expected_shape = (B, PROMPT_LAYERS, PROMPT_L, EMBED_DIM)
    assert out.shape == expected_shape, out.shape
    max_err = float(jnp.max(jnp.abs(out - ref)))
    assert max_err < 2e-3, f"max err {max_err}"

    print("KERNEL_OK")
</pallas_src>

<mosaic_0001>
module attributes {stable_mosaic.version = 11 : i64} {
  func.func @_linear_kernel(%arg0: i32, %arg1: memref<16x32xf32, #tpu.memory_space<vmem>>, %arg2: memref<32x128xf32, #tpu.memory_space<vmem>>, %arg3: memref<1x128xf32, #tpu.memory_space<vmem>>, %arg4: memref<16x128xf32, #tpu.memory_space<vmem>>) attributes {dimension_semantics = [#tpu.dimension_semantics<parallel>], iteration_bounds = array<i64: 1>, scalar_prefetch = 0 : i64, scratch_operands = 0 : i64, tpu.core_type = #tpu.core_type<tc>, window_params = [{transform_indices = @transform_0, window_bounds = array<i64: 16, 32>}, {pipeline_mode = #tpu.pipeline_mode<synchronous>, transform_indices = @transform_1, window_bounds = array<i64: 32, 128>}, {pipeline_mode = #tpu.pipeline_mode<synchronous>, transform_indices = @transform_2, window_bounds = array<i64: 1, 128>}, {transform_indices = @transform_3, window_bounds = array<i64: 16, 128>}]} {
    %c0 = arith.constant 0 : index
    %c0_0 = arith.constant 0 : index
    %0 = vector.load %arg1[%c0, %c0_0] : memref<16x32xf32, #tpu.memory_space<vmem>>, vector<16x32xf32>
    %c0_1 = arith.constant 0 : index
    %c0_2 = arith.constant 0 : index
    %1 = vector.load %arg2[%c0_1, %c0_2] : memref<32x128xf32, #tpu.memory_space<vmem>>, vector<32x128xf32>
    %cst = arith.constant dense<0.000000e+00> : vector<16x128xf32>
    %2 = tpu.matmul %0, %1, %cst {dimension_numbers = #tpu.dot_dimension_numbers<[1], [0], [0], [1], [0, 0, 1, 1], [], []>} : vector<16x32xf32>, vector<32x128xf32>, vector<16x128xf32> -> vector<16x128xf32>
    %c0_3 = arith.constant 0 : index
    %c0_4 = arith.constant 0 : index
    %3 = vector.load %arg3[%c0_3, %c0_4] : memref<1x128xf32, #tpu.memory_space<vmem>>, vector<1x128xf32>
    %4 = vector.broadcast %3 : vector<1x128xf32> to vector<16x128xf32>
    %5 = arith.addf %2, %4 : vector<16x128xf32>
    %c0_5 = arith.constant 0 : index
    %c0_6 = arith.constant 0 : index
    %6 = vector.load %arg4[%c0_5, %c0_6] : memref<16x128xf32, #tpu.memory_space<vmem>>, vector<16x128xf32>
    tpu.vector_store %arg4[%c0_5, %c0_6], %5 {strides = array<i32>} : memref<16x128xf32, #tpu.memory_space<vmem>>, vector<16x128xf32>,
    return
  }
  func.func @transform_0(%arg0: i32) -> (i32, i32) {
    %c0_i32 = arith.constant 0 : i32
    %c0_i32_0 = arith.constant 0 : i32
    return %arg0, %c0_i32 : i32, i32
  }
  func.func @transform_1(%arg0: i32) -> (i32, i32) {
    %c0_i32 = arith.constant 0 : i32
    %c0_i32_0 = arith.constant 0 : i32
    %c0_i32_1 = arith.constant 0 : i32
    return %c0_i32, %c0_i32_0 : i32, i32
  }
  func.func @transform_2(%arg0: i32) -> (i32, i32) {
    %c0_i32 = arith.constant 0 : i32
    %c0_i32_0 = arith.constant 0 : i32
    %c0_i32_1 = arith.constant 0 : i32
    return %c0_i32, %c0_i32_0 : i32, i32
  }
  func.func @transform_3(%arg0: i32) -> (i32, i32) {
    %c0_i32 = arith.constant 0 : i32
    %c0_i32_0 = arith.constant 0 : i32
    return %arg0, %c0_i32 : i32, i32
  }
}

module attributes {stable_mosaic.version = 11 : i64} {
  func.func @_attn_kernel(%arg0: i32, %arg1: memref<1x8x4xf32, #tpu.memory_space<vmem>>, %arg2: memref<1x8x4xf32, #tpu.memory_space<vmem>>, %arg3: memref<1x8x4xf32, #tpu.memory_space<vmem>>, %arg4: memref<1x8x4xf32, #tpu.memory_space<vmem>>) attributes {dimension_semantics = [#tpu.dimension_semantics<parallel>], iteration_bounds = array<i64: 16>, scalar_prefetch = 0 : i64, scratch_operands = 0 : i64, tpu.core_type = #tpu.core_type<tc>, window_params = [{transform_indices = @transform_0, window_bounds = array<i64: 1, 8, 4>}, {transform_indices = @transform_1, window_bounds = array<i64: 1, 8, 4>}, {transform_indices = @transform_2, window_bounds = array<i64: 1, 8, 4>}, {transform_indices = @transform_3, window_bounds = array<i64: 1, 8, 4>}]} {
    %c0 = arith.constant 0 : index
    %c0_0 = arith.constant 0 : index
    %c0_1 = arith.constant 0 : index
    %0 = vector.load %arg1[%c0, %c0_0, %c0_1] : memref<1x8x4xf32, #tpu.memory_space<vmem>>, vector<1x8x4xf32>
    %1 = vector.shape_cast %0 : vector<1x8x4xf32> to vector<8x4xf32>
    %c0_2 = arith.constant 0 : index
    %c0_3 = arith.constant 0 : index
    %c0_4 = arith.constant 0 : index
    %2 = vector.load %arg2[%c0_2, %c0_3, %c0_4] : memref<1x8x4xf32, #tpu.memory_space<vmem>>, vector<1x8x4xf32>
    %3 = vector.shape_cast %2 : vector<1x8x4xf32> to vector<8x4xf32>
    %c0_5 = arith.constant 0 : index
    %c0_6 = arith.constant 0 : index
    %c0_7 = arith.constant 0 : index
    %4 = vector.load %arg3[%c0_5, %c0_6, %c0_7] : memref<1x8x4xf32, #tpu.memory_space<vmem>>, vector<1x8x4xf32>
    %5 = vector.shape_cast %4 : vector<1x8x4xf32> to vector<8x4xf32>
    %cst = arith.constant dense<0.000000e+00> : vector<8x8xf32>
    %6 = tpu.matmul %1, %3, %cst {dimension_numbers = #tpu.dot_dimension_numbers<[1], [1], [0], [0], [0, 0, 1, 0], [], []>} : vector<8x4xf32>, vector<8x4xf32>, vector<8x8xf32> -> vector<8x8xf32>
    %cst_8 = arith.constant 5.000000e-01 : f32
    %7 = vector.broadcast %cst_8 : f32 to vector<8x8xf32>
    %8 = arith.mulf %6, %7 : vector<8x8xf32>
    %cst_9 = arith.constant dense<0xFF800000> : vector<8xf32>
    %9 = vector.multi_reduction <maximumf>, %8, %cst_9 [1] : vector<8x8xf32> to vector<8xf32>
    %10 = vector.shape_cast %9 : vector<8xf32> to vector<8x1xf32>
    %11 = vector.broadcast %10 : vector<8x1xf32> to vector<8x8xf32>
    %12 = arith.subf %8, %11 : vector<8x8xf32>
    %13 = math.exp %12 : vector<8x8xf32>
    %cst_10 = arith.constant dense<0.000000e+00> : vector<8xf32>
    %14 = vector.multi_reduction <add>, %13, %cst_10 [1] : vector<8x8xf32> to vector<8xf32>
    %15 = vector.shape_cast %14 : vector<8xf32> to vector<8x1xf32>
    %cst_11 = arith.constant dense<0.000000e+00> : vector<8x4xf32>
    %16 = tpu.matmul %13, %5, %cst_11 {dimension_numbers = #tpu.dot_dimension_numbers<[1], [0], [0], [1], [0, 0, 1, 1], [], []>} : vector<8x8xf32>, vector<8x4xf32>, vector<8x4xf32> -> vector<8x4xf32>
    %17 = vector.broadcast %15 : vector<8x1xf32> to vector<8x4xf32>
    %18 = arith.divf %16, %17 : vector<8x4xf32>
    %c0_12 = arith.constant 0 : index
    %c0_13 = arith.constant 0 : index
    %c0_14 = arith.constant 0 : index
    %19 = vector.load %arg4[%c0_12, %c0_13, %c0_14] : memref<1x8x4xf32, #tpu.memory_space<vmem>>, vector<1x8x4xf32>
    %20 = vector.shape_cast %19 : vector<1x8x4xf32> to vector<8x4xf32>
    %21 = vector.shape_cast %18 : vector<8x4xf32> to vector<1x8x4xf32>
    tpu.vector_store %arg4[%c0_12, %c0_13, %c0_14], %21 {strides = array<i32>} : memref<1x8x4xf32, #tpu.memory_space<vmem>>, vector<1x8x4xf32>,
    return
  }
  func.func @transform_0(%arg0: i32) -> (i32, i32, i32) {
    %c0_i32 = arith.constant 0 : i32
    %c0_i32_0 = arith.constant 0 : i32
    %c0_i32_1 = arith.constant 0 : i32
    return %arg0, %c0_i32, %c0_i32_0 : i32, i32, i32
  }
  func.func @transform_1(%arg0: i32) -> (i32, i32, i32) {
    %c0_i32 = arith.constant 0 : i32
    %c0_i32_0 = arith.constant 0 : i32
    %c0_i32_1 = arith.constant 0 : i32
    return %arg0, %c0_i32, %c0_i32_0 : i32, i32, i32
  }
  func.func @transform_2(%arg0: i32) -> (i32, i32, i32) {
    %c0_i32 = arith.constant 0 : i32
    %c0_i32_0 = arith.constant 0 : i32
    %c0_i32_1 = arith.constant 0 : i32
    return %arg0, %c0_i32, %c0_i32_0 : i32, i32, i32
  }
  func.func @transform_3(%arg0: i32) -> (i32, i32, i32) {
    %c0_i32 = arith.constant 0 : i32
    %c0_i32_0 = arith.constant 0 : i32
    %c0_i32_1 = arith.constant 0 : i32
    return %arg0, %c0_i32, %c0_i32_0 : i32, i32, i32
  }
}

module attributes {stable_mosaic.version = 11 : i64} {
  func.func @_linear_kernel(%arg0: i32, %arg1: memref<16x32xf32, #tpu.memory_space<vmem>>, %arg2: memref<32x2048xf32, #tpu.memory_space<vmem>>, %arg3: memref<1x2048xf32, #tpu.memory_space<vmem>>, %arg4: memref<16x2048xf32, #tpu.memory_space<vmem>>) attributes {dimension_semantics = [#tpu.dimension_semantics<parallel>], iteration_bounds = array<i64: 1>, scalar_prefetch = 0 : i64, scratch_operands = 0 : i64, tpu.core_type = #tpu.core_type<tc>, window_params = [{transform_indices = @transform_0, window_bounds = array<i64: 16, 32>}, {pipeline_mode = #tpu.pipeline_mode<synchronous>, transform_indices = @transform_1, window_bounds = array<i64: 32, 2048>}, {pipeline_mode = #tpu.pipeline_mode<synchronous>, transform_indices = @transform_2, window_bounds = array<i64: 1, 2048>}, {transform_indices = @transform_3, window_bounds = array<i64: 16, 2048>}]} {
    %c0 = arith.constant 0 : index
    %c0_0 = arith.constant 0 : index
    %0 = vector.load %arg1[%c0, %c0_0] : memref<16x32xf32, #tpu.memory_space<vmem>>, vector<16x32xf32>
    %c0_1 = arith.constant 0 : index
    %c0_2 = arith.constant 0 : index
    %1 = vector.load %arg2[%c0_1, %c0_2] : memref<32x2048xf32, #tpu.memory_space<vmem>>, vector<32x2048xf32>
    %cst = arith.constant dense<0.000000e+00> : vector<16x2048xf32>
    %2 = tpu.matmul %0, %1, %cst {dimension_numbers = #tpu.dot_dimension_numbers<[1], [0], [0], [1], [0, 0, 1, 1], [], []>} : vector<16x32xf32>, vector<32x2048xf32>, vector<16x2048xf32> -> vector<16x2048xf32>
    %c0_3 = arith.constant 0 : index
    %c0_4 = arith.constant 0 : index
    %3 = vector.load %arg3[%c0_3, %c0_4] : memref<1x2048xf32, #tpu.memory_space<vmem>>, vector<1x2048xf32>
    %4 = vector.broadcast %3 : vector<1x2048xf32> to vector<16x2048xf32>
    %5 = arith.addf %2, %4 : vector<16x2048xf32>
    %cst_5 = arith.constant 0.000000e+00 : f32
    %6 = vector.broadcast %cst_5 : f32 to vector<16x2048xf32>
    %7 = arith.maximumf %5, %6 : vector<16x2048xf32>
    %c0_6 = arith.constant 0 : index
    %c0_7 = arith.constant 0 : index
    %8 = vector.load %arg4[%c0_6, %c0_7] : memref<16x2048xf32, #tpu.memory_space<vmem>>, vector<16x2048xf32>
    tpu.vector_store %arg4[%c0_6, %c0_7], %7 {strides = array<i32>} : memref<16x2048xf32, #tpu.memory_space<vmem>>, vector<16x2048xf32>,
    return
  }
  func.func @transform_0(%arg0: i32) -> (i32, i32) {
    %c0_i32 = arith.constant 0 : i32
    %c0_i32_0 = arith.constant 0 : i32
    return %arg0, %c0_i32 : i32, i32
  }
  func.func @transform_1(%arg0: i32) -> (i32, i32) {
    %c0_i32 = arith.constant 0 : i32
    %c0_i32_0 = arith.constant 0 : i32
    %c0_i32_1 = arith.constant 0 : i32
    return %c0_i32, %c0_i32_0 : i32, i32
  }
  func.func @transform_2(%arg0: i32) -> (i32, i32) {
    %c0_i32 = arith.constant 0 : i32
    %c0_i32_0 = arith.constant 0 : i32
    %c0_i32_1 = arith.constant 0 : i32
    return %c0_i32, %c0_i32_0 : i32, i32
  }
  func.func @transform_3(%arg0: i32) -> (i32, i32) {
    %c0_i32 = arith.constant 0 : i32
    %c0_i32_0 = arith.constant 0 : i32
    return %arg0, %c0_i32 : i32, i32
  }
}

module attributes {stable_mosaic.version = 11 : i64} {
  func.func @_add_ln_kernel(%arg0: i32, %arg1: memref<16x32xf32, #tpu.memory_space<vmem>>, %arg2: memref<16x32xf32, #tpu.memory_space<vmem>>, %arg3: memref<1x32xf32, #tpu.memory_space<vmem>>, %arg4: memref<1x32xf32, #tpu.memory_space<vmem>>, %arg5: memref<16x32xf32, #tpu.memory_space<vmem>>) attributes {dimension_semantics = [#tpu.dimension_semantics<parallel>], iteration_bounds = array<i64: 1>, scalar_prefetch = 0 : i64, scratch_operands = 0 : i64, tpu.core_type = #tpu.core_type<tc>, window_params = [{transform_indices = @transform_0, window_bounds = array<i64: 16, 32>}, {transform_indices = @transform_1, window_bounds = array<i64: 16, 32>}, {pipeline_mode = #tpu.pipeline_mode<synchronous>, transform_indices = @transform_2, window_bounds = array<i64: 1, 32>}, {pipeline_mode = #tpu.pipeline_mode<synchronous>, transform_indices = @transform_3, window_bounds = array<i64: 1, 32>}, {transform_indices = @transform_4, window_bounds = array<i64: 16, 32>}]} {
    %c0 = arith.constant 0 : index
    %c0_0 = arith.constant 0 : index
    %0 = vector.load %arg1[%c0, %c0_0] : memref<16x32xf32, #tpu.memory_space<vmem>>, vector<16x32xf32>
    %c0_1 = arith.constant 0 : index
    %c0_2 = arith.constant 0 : index
    %1 = vector.load %arg2[%c0_1, %c0_2] : memref<16x32xf32, #tpu.memory_space<vmem>>, vector<16x32xf32>
    %2 = arith.addf %0, %1 : vector<16x32xf32>
    %cst = arith.constant dense<0.000000e+00> : vector<16xf32>
    %3 = vector.multi_reduction <add>, %2, %cst [1] : vector<16x32xf32> to vector<16xf32>
    %4 = vector.shape_cast %3 : vector<16xf32> to vector<16x1xf32>
    %cst_3 = arith.constant 3.200000e+01 : f32
    %5 = vector.broadcast %cst_3 : f32 to vector<16x1xf32>
    %6 = arith.divf %4, %5 : vector<16x1xf32>
    %7 = vector.broadcast %6 : vector<16x1xf32> to vector<16x32xf32>
    %8 = arith.subf %2, %7 : vector<16x32xf32>
    %9 = arith.mulf %8, %8 : vector<16x32xf32>
    %cst_4 = arith.constant dense<0.000000e+00> : vector<16xf32>
    %10 = vector.multi_reduction <add>, %9, %cst_4 [1] : vector<16x32xf32> to vector<16xf32>
    %11 = vector.shape_cast %10 : vector<16xf32> to vector<16x1xf32>
    %cst_5 = arith.constant 3.200000e+01 : f32
    %12 = vector.broadcast %cst_5 : f32 to vector<16x1xf32>
    %13 = arith.divf %11, %12 : vector<16x1xf32>
    %cst_6 = arith.constant 9.99999974E-6 : f32
    %14 = vector.broadcast %cst_6 : f32 to vector<16x1xf32>
    %15 = arith.addf %13, %14 : vector<16x1xf32>
    %16 = math.rsqrt %15 : vector<16x1xf32>
    %17 = vector.broadcast %16 : vector<16x1xf32> to vector<16x32xf32>
    %18 = arith.mulf %8, %17 : vector<16x32xf32>
    %c0_7 = arith.constant 0 : index
    %c0_8 = arith.constant 0 : index
    %19 = vector.load %arg3[%c0_7, %c0_8] : memref<1x32xf32, #tpu.memory_space<vmem>>, vector<1x32xf32>
    %20 = vector.broadcast %19 : vector<1x32xf32> to vector<16x32xf32>
    %21 = arith.mulf %18, %20 : vector<16x32xf32>
    %c0_9 = arith.constant 0 : index
    %c0_10 = arith.constant 0 : index
    %22 = vector.load %arg4[%c0_9, %c0_10] : memref<1x32xf32, #tpu.memory_space<vmem>>, vector<1x32xf32>
    %23 = vector.broadcast %22 : vector<1x32xf32> to vector<16x32xf32>
    %24 = arith.addf %21, %23 : vector<16x32xf32>
    %c0_11 = arith.constant 0 : index
    %c0_12 = arith.constant 0 : index
    %25 = vector.load %arg5[%c0_11, %c0_12] : memref<16x32xf32, #tpu.memory_space<vmem>>, vector<16x32xf32>
    tpu.vector_store %arg5[%c0_11, %c0_12], %24 {strides = array<i32>} : memref<16x32xf32, #tpu.memory_space<vmem>>, vector<16x32xf32>,
    return
  }
  func.func @transform_0(%arg0: i32) -> (i32, i32) {
    %c0_i32 = arith.constant 0 : i32
    %c0_i32_0 = arith.constant 0 : i32
    return %arg0, %c0_i32 : i32, i32
  }
  func.func @transform_1(%arg0: i32) -> (i32, i32) {
    %c0_i32 = arith.constant 0 : i32
    %c0_i32_0 = arith.constant 0 : i32
    return %arg0, %c0_i32 : i32, i32
  }
  func.func @transform_2(%arg0: i32) -> (i32, i32) {
    %c0_i32 = arith.constant 0 : i32
    %c0_i32_0 = arith.constant 0 : i32
    %c0_i32_1 = arith.constant 0 : i32
    return %c0_i32, %c0_i32_0 : i32, i32
  }
  func.func @transform_3(%arg0: i32) -> (i32, i32) {
    %c0_i32 = arith.constant 0 : i32
    %c0_i32_0 = arith.constant 0 : i32
    %c0_i32_1 = arith.constant 0 : i32
    return %c0_i32, %c0_i32_0 : i32, i32
  }
  func.func @transform_4(%arg0: i32) -> (i32, i32) {
    %c0_i32 = arith.constant 0 : i32
    %c0_i32_0 = arith.constant 0 : i32
    return %arg0, %c0_i32 : i32, i32
  }
}

module attributes {stable_mosaic.version = 11 : i64} {
  func.func @_linear_kernel(%arg0: i32, %arg1: memref<16x2048xf32, #tpu.memory_space<vmem>>, %arg2: memref<2048x128xf32, #tpu.memory_space<vmem>>, %arg3: memref<1x128xf32, #tpu.memory_space<vmem>>, %arg4: memref<16x128xf32, #tpu.memory_space<vmem>>) attributes {dimension_semantics = [#tpu.dimension_semantics<parallel>], iteration_bounds = array<i64: 1>, scalar_prefetch = 0 : i64, scratch_operands = 0 : i64, tpu.core_type = #tpu.core_type<tc>, window_params = [{transform_indices = @transform_0, window_bounds = array<i64: 16, 2048>}, {pipeline_mode = #tpu.pipeline_mode<synchronous>, transform_indices = @transform_1, window_bounds = array<i64: 2048, 128>}, {pipeline_mode = #tpu.pipeline_mode<synchronous>, transform_indices = @transform_2, window_bounds = array<i64: 1, 128>}, {transform_indices = @transform_3, window_bounds = array<i64: 16, 128>}]} {
    %c0 = arith.constant 0 : index
    %c0_0 = arith.constant 0 : index
    %0 = vector.load %arg1[%c0, %c0_0] : memref<16x2048xf32, #tpu.memory_space<vmem>>, vector<16x2048xf32>
    %c0_1 = arith.constant 0 : index
    %c0_2 = arith.constant 0 : index
    %1 = vector.load %arg2[%c0_1, %c0_2] : memref<2048x128xf32, #tpu.memory_space<vmem>>, vector<2048x128xf32>
    %cst = arith.constant dense<0.000000e+00> : vector<16x128xf32>
    %2 = tpu.matmul %0, %1, %cst {dimension_numbers = #tpu.dot_dimension_numbers<[1], [0], [0], [1], [0, 0, 1, 1], [], []>} : vector<16x2048xf32>, vector<2048x128xf32>, vector<16x128xf32> -> vector<16x128xf32>
    %c0_3 = arith.constant 0 : index
    %c0_4 = arith.constant 0 : index
    %3 = vector.load %arg3[%c0_3, %c0_4] : memref<1x128xf32, #tpu.memory_space<vmem>>, vector<1x128xf32>
    %4 = vector.broadcast %3 : vector<1x128xf32> to vector<16x128xf32>
    %5 = arith.addf %2, %4 : vector<16x128xf32>
    %c0_5 = arith.constant 0 : index
    %c0_6 = arith.constant 0 : index
    %6 = vector.load %arg4[%c0_5, %c0_6] : memref<16x128xf32, #tpu.memory_space<vmem>>, vector<16x128xf32>
    tpu.vector_store %arg4[%c0_5, %c0_6], %5 {strides = array<i32>} : memref<16x128xf32, #tpu.memory_space<vmem>>, vector<16x128xf32>,
    return
  }
  func.func @transform_0(%arg0: i32) -> (i32, i32) {
    %c0_i32 = arith.constant 0 : i32
    %c0_i32_0 = arith.constant 0 : i32
    return %arg0, %c0_i32 : i32, i32
  }
  func.func @transform_1(%arg0: i32) -> (i32, i32) {
    %c0_i32 = arith.constant 0 : i32
    %c0_i32_0 = arith.constant 0 : i32
    %c0_i32_1 = arith.constant 0 : i32
    return %c0_i32, %c0_i32_0 : i32, i32
  }
  func.func @transform_2(%arg0: i32) -> (i32, i32) {
    %c0_i32 = arith.constant 0 : i32
    %c0_i32_0 = arith.constant 0 : i32
    %c0_i32_1 = arith.constant 0 : i32
    return %c0_i32, %c0_i32_0 : i32, i32
  }
  func.func @transform_3(%arg0: i32) -> (i32, i32) {
    %c0_i32 = arith.constant 0 : i32
    %c0_i32_0 = arith.constant 0 : i32
    return %arg0, %c0_i32 : i32, i32
  }
}

module attributes {stable_mosaic.version = 11 : i64} {
  func.func @_linear_kernel(%arg0: i32, %arg1: memref<16x32xf32, #tpu.memory_space<vmem>>, %arg2: memref<32x128xf32, #tpu.memory_space<vmem>>, %arg3: memref<1x128xf32, #tpu.memory_space<vmem>>, %arg4: memref<16x128xf32, #tpu.memory_space<vmem>>) attributes {dimension_semantics = [#tpu.dimension_semantics<parallel>], iteration_bounds = array<i64: 1>, scalar_prefetch = 0 : i64, scratch_operands = 0 : i64, tpu.core_type = #tpu.core_type<tc>, window_params = [{transform_indices = @transform_0, window_bounds = array<i64: 16, 32>}, {pipeline_mode = #tpu.pipeline_mode<synchronous>, transform_indices = @transform_1, window_bounds = array<i64: 32, 128>}, {pipeline_mode = #tpu.pipeline_mode<synchronous>, transform_indices = @transform_2, window_bounds = array<i64: 1, 128>}, {transform_indices = @transform_3, window_bounds = array<i64: 16, 128>}]} {
    %c0 = arith.constant 0 : index
    %c0_0 = arith.constant 0 : index
    %0 = vector.load %arg1[%c0, %c0_0] : memref<16x32xf32, #tpu.memory_space<vmem>>, vector<16x32xf32>
    %c0_1 = arith.constant 0 : index
    %c0_2 = arith.constant 0 : index
    %1 = vector.load %arg2[%c0_1, %c0_2] : memref<32x128xf32, #tpu.memory_space<vmem>>, vector<32x128xf32>
    %cst = arith.constant dense<0.000000e+00> : vector<16x128xf32>
    %2 = tpu.matmul %0, %1, %cst {dimension_numbers = #tpu.dot_dimension_numbers<[1], [0], [0], [1], [0, 0, 1, 1], [], []>} : vector<16x32xf32>, vector<32x128xf32>, vector<16x128xf32> -> vector<16x128xf32>
    %c0_3 = arith.constant 0 : index
    %c0_4 = arith.constant 0 : index
    %3 = vector.load %arg3[%c0_3, %c0_4] : memref<1x128xf32, #tpu.memory_space<vmem>>, vector<1x128xf32>
    %4 = vector.broadcast %3 : vector<1x128xf32> to vector<16x128xf32>
    %5 = arith.addf %2, %4 : vector<16x128xf32>
    %c0_5 = arith.constant 0 : index
    %c0_6 = arith.constant 0 : index
    %6 = vector.load %arg4[%c0_5, %c0_6] : memref<16x128xf32, #tpu.memory_space<vmem>>, vector<16x128xf32>
    tpu.vector_store %arg4[%c0_5, %c0_6], %5 {strides = array<i32>} : memref<16x128xf32, #tpu.memory_space<vmem>>, vector<16x128xf32>,
    return
  }
  func.func @transform_0(%arg0: i32) -> (i32, i32) {
    %c0_i32 = arith.constant 0 : i32
    %c0_i32_0 = arith.constant 0 : i32
    return %arg0, %c0_i32 : i32, i32
  }
  func.func @transform_1(%arg0: i32) -> (i32, i32) {
    %c0_i32 = arith.constant 0 : i32
    %c0_i32_0 = arith.constant 0 : i32
    %c0_i32_1 = arith.constant 0 : i32
    return %c0_i32, %c0_i32_0 : i32, i32
  }
  func.func @transform_2(%arg0: i32) -> (i32, i32) {
    %c0_i32 = arith.constant 0 : i32
    %c0_i32_0 = arith.constant 0 : i32
    %c0_i32_1 = arith.constant 0 : i32
    return %c0_i32, %c0_i32_0 : i32, i32
  }
  func.func @transform_3(%arg0: i32) -> (i32, i32) {
    %c0_i32 = arith.constant 0 : i32
    %c0_i32_0 = arith.constant 0 : i32
    return %arg0, %c0_i32 : i32, i32
  }
}

</mosaic_0001>

<bundles_post_ra>
// kernel: general_prompt_encoder_decoder.20
= control target key start
LH: loop header
LB: loop body
LE: loop exit
PB: predicated region body
PF: predicated region fallthrough
CT: control target
= control target key end

     0   :  { %vm24_vm0 = vcmask 261120   ;;  %s114_s1 = inlined_call_operand.vmem [shape: f32[32,128], index: 1, kind: input, shape index: {}]   ;;  %s115_s2 = inlined_call_operand.vmem [shape: f32[1,128], index: 2, kind: input, shape index: {}]   ;;  %s116_s0 = inlined_call_operand.vmem [shape: f32[16,32], index: 0, kind: input, shape index: {}]   ;;  %s117_s3 = inlined_call_operand.vmem [shape: f32[16,128], index: 3, kind: output, shape index: {}]  }
   0x1   :  { %v19_v0 = vld [vmem:[%s114_s1 + $0x18] sm:$0xff]  ;;  %v18_v1 = vld [vmem:[%s114_s1 + $0x10] sm:$0xff]  ;;  %v17_v2 = vld [vmem:[%s114_s1 + $0x8] sm:$0xff] }
   0x2   :  { %43 = vmatpush.msra.mxu0 %v19_v0  ;;  %62 = vmatpush.msra.mxu1 %v19_v0  ;;  %v16_v3 = vld [vmem:[%s114_s1] sm:$0xff]  ;;  %v15_v5 = vld [vmem:[%s116_s0 + $0x8] sm:$0xff] }
   0x3   :  { %v14_v4 = vld [vmem:[%s116_s0] sm:$0xff] }
   0x4   :  { %44 = vmatpush.msra.mxu0 %v18_v1  ;;  %63 = vmatpush.msra.mxu1 %v18_v1  ;;  %v66_v6 = vld [vmem:[%s115_s2] ss:$0 sm:$0xff] }
   0x6   :  { %45 = vmatpush.msra.mxu0 %v17_v2  ;;  %64 = vmatpush.msra.mxu1 %v17_v2 }
   0x8   :  { %46 = vmatpush.msra.mxu0 %v16_v3  ;;  %65 = vmatpush.msra.mxu1 %v16_v3 }
   0x9   :  { %60 = vmatmul.msk.f32.vlgmr.msra.gmra.mxu0 %vm24_vm0, %v14_v4  ;;  %61 = vmatmul.msk.f32.vlgmr.msra.gmra.mxu1 %vm24_vm0, %v15_v5 }
  0x86   :  { %v48_v7 = vpop.f32.mrf.mxu0  ;;  %v51_v8 = vpop.f32.mrf.mxu1 }
  0x87   :  { %v49_v9 = vadd.f32 %v66_v6, %v48_v7  ;;  %v52_v10 = vadd.f32 %v66_v6, %v51_v8 }
  0x89   :  { %54 = vst [vmem:[%s117_s3] sm:$0xff] %v49_v9 }
  0x8a   :  { %55 = vst [vmem:[%s117_s3 + $0x8] sm:$0xff] %v52_v10 }

// kernel: general_prompt_encoder_decoder.21
= control target key start
LH: loop header
LB: loop body
LE: loop exit
PB: predicated region body
PF: predicated region fallthrough
CT: control target
= control target key end

     0   :  { %s411_s12 = smov 0   ;;  %s443_s0 = inlined_call_operand.vmem [shape: f32[16,8,4], index: 0, kind: input, shape index: {}]   ;;  %s444_s1 = inlined_call_operand.vmem [shape: f32[16,8,4], index: 1, kind: input, shape index: {}]   ;;  %s445_s2 = inlined_call_operand.vmem [shape: f32[16,8,4], index: 2, kind: input, shape index: {}]   ;;  %s446_s3 = inlined_call_operand.vmem [shape: f32[16,8,4], index: 3, kind: output, shape index: {}]  }
   0x1 LB: > { %s357_s13 = sadd.s32 4294967295, %s389_s12   ;;  %p361_p0 = scmp.ge.s32.totalorder %s389_s12, 1  ;;  %s389_s12 = sphi %s411_s12, %s13_s12  }
   0x2   : > { %p154_p1 = scmp.lt.s32.totalorder %s389_s12, 17 }
   0x4   : > { %p155_p2 = pnand %p361_p0, %p154_p1 }
   0x5   : > { %p184_p3 = scmp.lt.s32.totalorder (!%p155_p2), %s357_s13, 15 }
   0x6   : > { %158 = sbr.rel (%p155_p2) target bundleno = 411 (0x19b), region = 32 }
   0xb   : > { %s448_s13 = smov (!%p184_p3, %s357_s13), 15  ;;  %vm203_vm0 = vcmask 31744   ;;  %vm231_vm1 = vcmask 64512  }
   0xc   : > { %s419_s14 = sshll.u32 %s448_s13, 3 }
   0xd   : > { %s191_s17 = scalar_lea.vmem %s444_s1, %s419_s14  ;;  %s187_s20 = scalar_lea.vmem %s443_s0, %s419_s14 }
   0xe   : > { %v201_v0 = vld [vmem:[%s191_s17] sm:$0xff]  ;;  %s195_s23 = scalar_lea.vmem %s445_s2, %s419_s14  ;;  %s199_s26 = scalar_lea.vmem %s446_s3, %s419_s14 }
   0xf   : > { %366 = vmatpush.xpose.msk.msra.mxu0 %vm203_vm0, %v201_v0  ;;  %v200_v1 = vld [vmem:[%s187_s20] sm:$0xff] }
  0x10   : > { %v202_v5 = vld [vmem:[%s195_s23] sm:$0xff] }
  0x11   : > { %259 = vmatpush.msra.mxu1 %v202_v5 }
  0x12   : > { %367 = vmatmul.msk.f32.vlgmr.msra.gmra.mxu0 %vm203_vm0, %v200_v1 }
  0x8f   : > { %v227_v2 = vpop.f32.mrf.mxu0 }
  0x90   : > { %v230_v3 = vmul.f32 0.5, %v227_v2 }
  0x92   : > { %v232_v4 = vsel %vm231_vm1, %v230_v3, -inf }
  0x93   : > { %233 = vmax.xlane.f32.xlu0 %v232_v4 }
 0x106   : > { %v234_v6 = vpop.xlane.xlu0 %233 }
 0x107   : > { %v235_v7 = vsub.f32 %v230_v3, %v234_v6 }
 0x109   : > { %v236_v8 = vmul.f32 1.442695, %v235_v7 }
 0x10b   : > { %379 = vpow2.f32 %v236_v8 }
 0x111   : > { %v380_v9 = vpop.eup %379 }
 0x112   : > { %368 = vmatmul.msk.f32.vlgmr.msra.gmra.mxu1 %vm231_vm1, %v380_v9  ;;  %v238_v10 = vsel %vm231_vm1, %v380_v9, 0.0 }
 0x113   : > { %239 = vadd.xlane.f32.xlu0 %v238_v10 }
 0x186   : > { %v240_v11 = vpop.xlane.xlu0 %239 }
 0x187   : > { %381 = vrcp.f32 %v240_v11  ;;  %v275_v15 = vand.u32 2147483648, %v240_v11  ;;  %v273_v17 = vand.u32 2147483647, %v240_v11  ;;  %vm269_vm3 = vweird.f32 %v240_v11 }
 0x189   : > { %v276_v19 = vor.u32 1.1754944e-38, %v275_v15  ;;  %vm274_vm5 = vcmp.eq.f32.partialorder %v273_v17, 8.507059e+37 }
 0x18d   : > { %v382_v12 = vpop.eup %381 }
 0x18e   : > { %v265_v13 = vmul.f32 %v382_v12, %v240_v11  ;;  %vm270_vm2 = vweird.f32 %v382_v12 }
 0x18f   : > { %vm271_vm4 = vmor %vm269_vm3, %vm270_vm2  ;;  %v261_v21 = vpop.f32.mrf.mxu1 }
 0x190   : > { %v266_v14 = vsub.f32 1.0, %v265_v13 }
 0x192   : > { %v267_v16 = vmul.f32 %v382_v12, %v266_v14 }
 0x194   : > { %v268_v18 = vadd.f32 %v382_v12, %v267_v16 }
 0x196   : > { %v272_v20 = vsel %vm271_vm4, %v382_v12, %v268_v18 }
 0x197   : > { %v277_v22 = vsel %vm274_vm5, %v276_v19, %v272_v20 }
 0x198   : > { %v278_v23 = vmul.f32 %v277_v22, %v261_v21 }
 0x19a   : > { %279 = vst.msk [vmem:[%s199_s26] sm:$0xff] %vm203_vm0, %v278_v23 }
 0x19b PF: > { %s13_s12 = sadd.s32 1, %s389_s12  }
 0x19c   : > { %p10_p4 = scmp.ge.s32.totalorder %s13_s12, 18  }
 0x19e   :  { %12 = sbr.rel (!%p10_p4) target bundleno = 1 (0x1), region = 68 }

// kernel: general_prompt_encoder_decoder.23
= control target key start
LH: loop header
LB: loop body
LE: loop exit
PB: predicated region body
PF: predicated region fallthrough
CT: control target
= control target key end

     0   :  { %vm23_vm0 = vcmask 261120   ;;  %v102_v8 = vmov 32.0   ;;  %s158_s0 = inlined_call_operand.vmem [shape: f32[16,32], index: 0, kind: input, shape index: {}]   ;;  %s159_s1 = inlined_call_operand.vmem [shape: f32[16,32], index: 1, kind: input, shape index: {}]   ;;  %s160_s2 = inlined_call_operand.vmem [shape: f32[1,32], index: 2, kind: input, shape index: {}]   ;;  %s161_s3 = inlined_call_operand.vmem [shape: f32[1,32], index: 3, kind: input, shape index: {}]   ;;  %s162_s4 = inlined_call_operand.vmem [shape: f32[16,32], index: 4, kind: output, shape index: {}]  }
   0x1   :  { %v17_v0 = vld [vmem:[%s158_s0] sm:$0xff]  ;;  %v18_v3 = vld [vmem:[%s158_s0 + $0x8] sm:$0xff]  ;;  %96 = vrcp.f32 %v102_v8 }
   0x2   :  { %v19_v1 = vld [vmem:[%s159_s1] sm:$0xff]  ;;  %v20_v4 = vld [vmem:[%s159_s1 + $0x8] sm:$0xff] }
   0x3   :  { %v21_v2 = vadd.f32 %v19_v1, %v17_v0  ;;  %v22_v6 = vadd.f32 %v20_v4, %v18_v3  ;;  %v94_v39 = vld [vmem:[%s160_s2] ss:$0 sm:$0xff] }
   0x4   :  { %v95_v42 = vld [vmem:[%s161_s3] ss:$0 sm:$0xff] }
   0x5   :  { %v24_v5 = vsel %vm23_vm0, %v21_v2, 0.0  ;;  %v27_v7 = vsel %vm23_vm0, %v22_v6, 0.0 }
   0x6   :  { %25 = vadd.xlane.f32.xlu0 %v24_v5 }
   0x7   :  { %v97_v9 = vpop.eup %96 }
   0x8   :  { %v31_v10 = vmul.f32 32.0, %v97_v9  ;;  %vm35_vm1 = vweird.f32 %v97_v9 }
   0xa   :  { %v32_v11 = vsub.f32 1.0, %v31_v10 }
   0xc   :  { %v33_v12 = vmul.f32 %v97_v9, %v32_v11 }
   0xe   :  { %28 = vadd.xlane.f32.xlu0 %v27_v7  ;;  %v34_v13 = vadd.f32 %v97_v9, %v33_v12 }
  0x10   :  { %v36_v14 = vsel %vm35_vm1, %v97_v9, %v34_v13 }
  0x79   :  { %v26_v15 = vpop.xlane.xlu0 %25 }
  0x7a   :  { %v37_v16 = vmul.f32 %v36_v14, %v26_v15 }
  0x7c   :  { %v39_v17 = vsub.f32 %v21_v2, %v37_v16 }
  0x7e   :  { %v41_v18 = vmul.f32 %v39_v17, %v39_v17 }
  0x80   :  { %v43_v19 = vsel %vm23_vm0, %v41_v18, 0.0 }
  0x81   :  { %44 = vadd.xlane.f32.xlu1 %v43_v19  ;;  %v29_v20 = vpop.xlane.xlu0 %28 }
  0x82   :  { %v38_v21 = vmul.f32 %v36_v14, %v29_v20 }
  0x84   :  { %v40_v22 = vsub.f32 %v22_v6, %v38_v21 }
  0x86   :  { %v42_v23 = vmul.f32 %v40_v22, %v40_v22 }
  0x88   :  { %v46_v24 = vsel %vm23_vm0, %v42_v23, 0.0 }
  0x89   :  { %47 = vadd.xlane.f32.xlu1 %v46_v24 }
  0xf4   :  { %v45_v25 = vpop.xlane.xlu1 %44 }
  0xf5   :  { %v49_v26 = vmul.f32 %v45_v25, %v36_v14 }
  0xf7   :  { %v51_v27 = vadd.f32 1e-05, %v49_v26 }
  0xf9   :  { %98 = vrsqrt.f32 %v51_v27  ;;  %vm59_vm3 = vweird.f32 %v51_v27 }
  0xfc   :  { %v48_v28 = vpop.xlane.xlu1 %47 }
  0xfd   :  { %v50_v29 = vmul.f32 %v48_v28, %v36_v14 }
  0xff   :  { %v99_v30 = vpop.eup %98  ;;  %v52_v31 = vadd.f32 1e-05, %v50_v29 }
 0x100   :  { %v54_v32 = vmul.f32 %v99_v30, %v51_v27  ;;  %vm60_vm2 = vweird.f32 %v99_v30 }
 0x101   :  { %100 = vrsqrt.f32 %v52_v31  ;;  %vm61_vm4 = vmor %vm59_vm3, %vm60_vm2  ;;  %vm69_vm6 = vweird.f32 %v52_v31 }
 0x102   :  { %v55_v33 = vmul.f32 %v99_v30, %v54_v32 }
 0x104   :  { %v56_v34 = vmul.f32 0.5, %v55_v33 }
 0x106   :  { %v57_v35 = vsub.f32 1.5, %v56_v34 }
 0x107   :  { %v101_v36 = vpop.eup %100 }
 0x108   :  { %v58_v37 = vmul.f32 %v99_v30, %v57_v35  ;;  %v64_v38 = vmul.f32 %v101_v36, %v52_v31  ;;  %vm70_vm5 = vweird.f32 %v101_v36 }
 0x109   :  { %vm71_vm7 = vmor %vm69_vm6, %vm70_vm5 }
 0x10a   :  { %v62_v40 = vsel %vm61_vm4, %v99_v30, %v58_v37  ;;  %v65_v41 = vmul.f32 %v101_v36, %v64_v38 }
 0x10b   :  { %v73_v43 = vmul.f32 %v62_v40, %v39_v17 }
 0x10c   :  { %v66_v44 = vmul.f32 0.5, %v65_v41 }
 0x10d   :  { %v79_v45 = vmul.f32 %v94_v39, %v73_v43 }
 0x10e   :  { %v67_v46 = vsub.f32 1.5, %v66_v44 }
 0x10f   :  { %v85_v47 = vadd.f32 %v95_v42, %v79_v45 }
 0x110   :  { %v68_v48 = vmul.f32 %v101_v36, %v67_v46 }
 0x111   :  { %87 = vst.msk [vmem:[%s162_s4] sm:$0xff] %vm23_vm0, %v85_v47 }
 0x112   :  { %v72_v49 = vsel %vm71_vm7, %v101_v36, %v68_v48 }
 0x113   :  { %v74_v50 = vmul.f32 %v72_v49, %v40_v22 }
 0x115   :  { %v80_v51 = vmul.f32 %v94_v39, %v74_v50 }
 0x117   :  { %v86_v52 = vadd.f32 %v95_v42, %v80_v51 }
 0x119   :  { %88 = vst.msk [vmem:[%s162_s4 + $0x8] sm:$0xff] %vm23_vm0, %v86_v52 }

// kernel: general_prompt_encoder_decoder.24
= control target key start
LH: loop header
LB: loop body
LE: loop exit
PB: predicated region body
PF: predicated region fallthrough
CT: control target
= control target key end

     0   :  { %vm116_vm0 = vcmask 261120   ;;  %s999_s1 = inlined_call_operand.vmem [shape: f32[32,2048], index: 1, kind: input, shape index: {}]   ;;  %s1000_s0 = inlined_call_operand.vmem [shape: f32[16,32], index: 0, kind: input, shape index: {}]   ;;  %s1001_s2 = inlined_call_operand.vmem [shape: f32[1,2048], index: 2, kind: input, shape index: {}]   ;;  %s1002_s3 = inlined_call_operand.vmem [shape: f32[16,2048], index: 3, kind: output, shape index: {}]  }
   0x1   :  { %v66_v0 = vld [vmem:[%s999_s1 + $0x190] sm:$0xff]  ;;  %v67_v1 = vld [vmem:[%s999_s1 + $0x198] sm:$0xff]  ;;  %v64_v6 = vld [vmem:[%s999_s1 + $0x180] sm:$0xff] }
   0x2   :  { %v50_v2 = vld [vmem:[%s999_s1 + $0x110] sm:$0xff]  ;;  %181 = vmatpush.msra.mxu2 %v66_v0  ;;  %204 = vmatpush.msra.mxu3 %v67_v1  ;;  %v51_v3 = vld [vmem:[%s999_s1 + $0x118] sm:$0xff]  ;;  %v65_v7 = vld [vmem:[%s999_s1 + $0x188] sm:$0xff] }
   0x3   :  { %v34_v4 = vld [vmem:[%s999_s1 + $0x90] sm:$0xff]  ;;  %v35_v5 = vld [vmem:[%s999_s1 + $0x98] sm:$0xff]  ;;  %135 = vmatpush.msra.mxu0 %v64_v6  ;;  %158 = vmatpush.msra.mxu1 %v65_v7  ;;  %v48_v10 = vld [vmem:[%s999_s1 + $0x100] sm:$0xff] }
   0x4   :  { %182 = vmatpush.msra.mxu2 %v50_v2  ;;  %205 = vmatpush.msra.mxu3 %v51_v3  ;;  %v18_v8 = vld [vmem:[%s999_s1 + $0x10] sm:$0xff]  ;;  %v19_v9 = vld [vmem:[%s999_s1 + $0x18] sm:$0xff]  ;;  %v49_v11 = vld [vmem:[%s999_s1 + $0x108] sm:$0xff] }
   0x5   :  { %v650_v12 = vld [vmem:[%s1000_s0] sm:$0xff]  ;;  %v70_v13 = vld [vmem:[%s999_s1 + $0x1b0] sm:$0xff]  ;;  %v71_v14 = vld [vmem:[%s999_s1 + $0x1b8] sm:$0xff]  ;;  %136 = vmatpush.msra.mxu0 %v48_v10  ;;  %159 = vmatpush.msra.mxu1 %v49_v11 }
   0x6   :  { %183 = vmatpush.msra.mxu2 %v34_v4  ;;  %206 = vmatpush.msra.mxu3 %v35_v5  ;;  %v32_v15 = vld [vmem:[%s999_s1 + $0x80] sm:$0xff]  ;;  %v33_v16 = vld [vmem:[%s999_s1 + $0x88] sm:$0xff]  ;;  %v54_v17 = vld [vmem:[%s999_s1 + $0x130] sm:$0xff] }
   0x7   :  { %v55_v18 = vld [vmem:[%s999_s1 + $0x138] sm:$0xff]  ;;  %v16_v19 = vld [vmem:[%s999_s1] sm:$0xff]  ;;  %v17_v20 = vld [vmem:[%s999_s1 + $0x8] sm:$0xff]  ;;  %137 = vmatpush.msra.mxu0 %v32_v15  ;;  %160 = vmatpush.msra.mxu1 %v33_v16 }
   0x8   :  { %184 = vmatpush.msra.mxu2 %v18_v8  ;;  %207 = vmatpush.msra.mxu3 %v19_v9  ;;  %v68_v21 = vld [vmem:[%s999_s1 + $0x1a0] sm:$0xff]  ;;  %v69_v22 = vld [vmem:[%s999_s1 + $0x1a8] sm:$0xff]  ;;  %v38_v23 = vld [vmem:[%s999_s1 + $0xb0] sm:$0xff] }
   0x9   :  { %563 = vmatmul.msk.f32.vlgmr.msra.gmra.mxu2 %vm116_vm0, %v650_v12  ;;  %565 = vmatmul.msk.f32.vlgmr.msra.gmra.mxu3 %vm116_vm0, %v650_v12  ;;  %v39_v24 = vld [vmem:[%s999_s1 + $0xb8] sm:$0xff]  ;;  %v699_v25 = vld [vmem:[%s1000_s0 + $0x8] sm:$0xff]  ;;  %v52_v26 = vld [vmem:[%s999_s1 + $0x120] sm:$0xff] }
   0xa   :  { %273 = vmatpush.msrb.mxu2 %v70_v13  ;;  %296 = vmatpush.msrb.mxu3 %v71_v14  ;;  %v53_v27 = vld [vmem:[%s999_s1 + $0x128] sm:$0xff]  ;;  %v22_v28 = vld [vmem:[%s999_s1 + $0x30] sm:$0xff]  ;;  %v23_v29 = vld [vmem:[%s999_s1 + $0x38] sm:$0xff] }
   0xb   :  { %138 = vmatpush.msra.mxu0 %v16_v19  ;;  %161 = vmatpush.msra.mxu1 %v17_v20  ;;  %v36_v30 = vld [vmem:[%s999_s1 + $0xa0] sm:$0xff]  ;;  %v37_v31 = vld [vmem:[%s999_s1 + $0xa8] sm:$0xff]  ;;  %v74_v32 = vld [vmem:[%s999_s1 + $0x1d0] sm:$0xff] }
   0xc   :  { %274 = vmatpush.msrb.mxu2 %v54_v17  ;;  %297 = vmatpush.msrb.mxu3 %v55_v18  ;;  %v75_v33 = vld [vmem:[%s999_s1 + $0x1d8] sm:$0xff]  ;;  %v20_v34 = vld [vmem:[%s999_s1 + $0x20] sm:$0xff]  ;;  %v21_v35 = vld [vmem:[%s999_s1 + $0x28] sm:$0xff] }
   0xd   :  { %559 = vmatmul.msk.f32.vlgmr.msra.gmra.mxu0 %vm116_vm0, %v650_v12  ;;  %561 = vmatmul.msk.f32.vlgmr.msra.gmra.mxu1 %vm116_vm0, %v650_v12  ;;  %v58_v36 = vld [vmem:[%s999_s1 + $0x150] sm:$0xff]  ;;  %v59_v37 = vld [vmem:[%s999_s1 + $0x158] sm:$0xff]  ;;  %v72_v38 = vld [vmem:[%s999_s1 + $0x1c0] sm:$0xff] }
   0xe   :  { %227 = vmatpush.msrb.mxu0 %v68_v21  ;;  %250 = vmatpush.msrb.mxu1 %v69_v22  ;;  %v73_v39 = vld [vmem:[%s999_s1 + $0x1c8] sm:$0xff]  ;;  %v42_v40 = vld [vmem:[%s999_s1 + $0xd0] sm:$0xff]  ;;  %v43_v41 = vld [vmem:[%s999_s1 + $0xd8] sm:$0xff] }
   0xf   :  { %275 = vmatpush.msrb.mxu2 %v38_v23  ;;  %298 = vmatpush.msrb.mxu3 %v39_v24  ;;  %v56_v42 = vld [vmem:[%s999_s1 + $0x140] sm:$0xff]  ;;  %v57_v43 = vld [vmem:[%s999_s1 + $0x148] sm:$0xff]  ;;  %v26_v44 = vld [vmem:[%s999_s1 + $0x50] sm:$0xff] }
  0x10   :  { %228 = vmatpush.msrb.mxu0 %v52_v26  ;;  %251 = vmatpush.msrb.mxu1 %v53_v27  ;;  %v27_v45 = vld [vmem:[%s999_s1 + $0x58] sm:$0xff]  ;;  %v40_v46 = vld [vmem:[%s999_s1 + $0xc0] sm:$0xff]  ;;  %v41_v47 = vld [vmem:[%s999_s1 + $0xc8] sm:$0xff] }
  0x11   :  { %564 = vmatmul.msk.f32.gmra.mxu2 %vm116_vm0, %v699_v25  ;;  %566 = vmatmul.msk.f32.gmra.mxu3 %vm116_vm0, %v699_v25  ;;  %v78_v48 = vld [vmem:[%s999_s1 + $0x1f0] sm:$0xff]  ;;  %v79_v49 = vld [vmem:[%s999_s1 + $0x1f8] sm:$0xff]  ;;  %v24_v50 = vld [vmem:[%s999_s1 + $0x40] sm:$0xff] }
  0x12   :  { %276 = vmatpush.msrb.mxu2 %v22_v28  ;;  %299 = vmatpush.msrb.mxu3 %v23_v29  ;;  %v25_v51 = vld [vmem:[%s999_s1 + $0x48] sm:$0xff]  ;;  %v62_v52 = vld [vmem:[%s999_s1 + $0x170] sm:$0xff]  ;;  %v63_v53 = vld [vmem:[%s999_s1 + $0x178] sm:$0xff] }
  0x13   :  { %229 = vmatpush.msrb.mxu0 %v36_v30  ;;  %252 = vmatpush.msrb.mxu1 %v37_v31  ;;  %v76_v54 = vld [vmem:[%s999_s1 + $0x1e0] sm:$0xff]  ;;  %v77_v55 = vld [vmem:[%s999_s1 + $0x1e8] sm:$0xff]  ;;  %v46_v56 = vld [vmem:[%s999_s1 + $0xf0] sm:$0xff] }
  0x14   :  { %365 = vmatpush.msra.mxu2 %v74_v32  ;;  %388 = vmatpush.msra.mxu3 %v75_v33  ;;  %v47_v57 = vld [vmem:[%s999_s1 + $0xf8] sm:$0xff]  ;;  %v60_v58 = vld [vmem:[%s999_s1 + $0x160] sm:$0xff]  ;;  %v61_v59 = vld [vmem:[%s999_s1 + $0x168] sm:$0xff] }
  0x15   :  { %560 = vmatmul.msk.f32.gmra.mxu0 %vm116_vm0, %v699_v25  ;;  %562 = vmatmul.msk.f32.gmra.mxu1 %vm116_vm0, %v699_v25  ;;  %v30_v60 = vld [vmem:[%s999_s1 + $0x70] sm:$0xff]  ;;  %v31_v61 = vld [vmem:[%s999_s1 + $0x78] sm:$0xff]  ;;  %v44_v62 = vld [vmem:[%s999_s1 + $0xe0] sm:$0xff] }
  0x16   :  { %230 = vmatpush.msrb.mxu0 %v20_v34  ;;  %253 = vmatpush.msrb.mxu1 %v21_v35  ;;  %v45_v63 = vld [vmem:[%s999_s1 + $0xe8] sm:$0xff]  ;;  %v28_v0 = vld [vmem:[%s999_s1 + $0x60] sm:$0xff] }
  0x17   :  { %366 = vmatpush.msra.mxu2 %v58_v36  ;;  %389 = vmatpush.msra.mxu3 %v59_v37  ;;  %v29_v1 = vld [vmem:[%s999_s1 + $0x68] sm:$0xff]  ;;  %v880_v2 = vld [vmem:[%s1001_s2] sm:$0xff] }
  0x18   :  { %319 = vmatpush.msra.mxu0 %v72_v38  ;;  %342 = vmatpush.msra.mxu1 %v73_v39  ;;  %v84_v3 = vperm.slane %v880_v2, 0  ;;  %v85_v4 = vperm.slane %v880_v2, 1  ;;  %v86_v5 = vperm.slane %v880_v2, 2  ;;  %v87_v6 = vperm.slane %v880_v2, 3 }
  0x19   :  { %571 = vmatmul.msk.f32.vlgmr.msrb.gmra.mxu2 %vm116_vm0, %v650_v12  ;;  %573 = vmatmul.msk.f32.vlgmr.msrb.gmra.mxu3 %vm116_vm0, %v650_v12  ;;  %v88_v31 = vperm.slane %v880_v2, 4  ;;  %v89_v32 = vperm.slane %v880_v2, 5  ;;  %v90_v33 = vperm.slane %v880_v2, 6  ;;  %v91_v34 = vperm.slane %v880_v2, 7 }
  0x1a   :  { %367 = vmatpush.msra.mxu2 %v42_v40  ;;  %390 = vmatpush.msra.mxu3 %v43_v41 }
  0x1b   :  { %320 = vmatpush.msra.mxu0 %v56_v42  ;;  %343 = vmatpush.msra.mxu1 %v57_v43 }
  0x1c   :  { %368 = vmatpush.msra.mxu2 %v26_v44  ;;  %391 = vmatpush.msra.mxu3 %v27_v45 }
  0x1d   :  { %567 = vmatmul.msk.f32.vlgmr.msrb.gmra.mxu0 %vm116_vm0, %v650_v12  ;;  %569 = vmatmul.msk.f32.vlgmr.msrb.gmra.mxu1 %vm116_vm0, %v650_v12 }
  0x1e   :  { %321 = vmatpush.msra.mxu0 %v40_v46  ;;  %344 = vmatpush.msra.mxu1 %v41_v47 }
  0x1f   :  { %457 = vmatpush.msrb.mxu2 %v78_v48  ;;  %480 = vmatpush.msrb.mxu3 %v79_v49 }
  0x20   :  { %322 = vmatpush.msra.mxu0 %v24_v50  ;;  %345 = vmatpush.msra.mxu1 %v25_v51 }
  0x21   :  { %572 = vmatmul.msk.f32.gmra.mxu2 %vm116_vm0, %v699_v25  ;;  %574 = vmatmul.msk.f32.gmra.mxu3 %vm116_vm0, %v699_v25 }
  0x22   :  { %458 = vmatpush.msrb.mxu2 %v62_v52  ;;  %481 = vmatpush.msrb.mxu3 %v63_v53 }
  0x23   :  { %411 = vmatpush.msrb.mxu0 %v76_v54  ;;  %434 = vmatpush.msrb.mxu1 %v77_v55  ;;  %v929_v55 = vld [vmem:[%s1001_s2 + $0x8] sm:$0xff] }
  0x24   :  { %459 = vmatpush.msrb.mxu2 %v46_v56  ;;  %482 = vmatpush.msrb.mxu3 %v47_v57 }
  0x25   :  { %568 = vmatmul.msk.f32.gmra.mxu0 %vm116_vm0, %v699_v25  ;;  %570 = vmatmul.msk.f32.gmra.mxu1 %vm116_vm0, %v699_v25 }
  0x26   :  { %412 = vmatpush.msrb.mxu0 %v60_v58  ;;  %435 = vmatpush.msrb.mxu1 %v61_v59 }
  0x27   :  { %460 = vmatpush.msrb.mxu2 %v30_v60  ;;  %483 = vmatpush.msrb.mxu3 %v31_v61  ;;  %v92_v60 = vperm.slane %v929_v55, 0  ;;  %v93_v61 = vperm.slane %v929_v55, 1 }
  0x28   :  { %413 = vmatpush.msrb.mxu0 %v44_v62  ;;  %436 = vmatpush.msrb.mxu1 %v45_v63  ;;  %v94_v62 = vperm.slane %v929_v55, 2  ;;  %v95_v63 = vperm.slane %v929_v55, 3 }
  0x29   :  { %579 = vmatmul.msk.f32.vlgmr.msra.gmra.mxu2 %vm116_vm0, %v650_v12  ;;  %581 = vmatmul.msk.f32.vlgmr.msra.gmra.mxu3 %vm116_vm0, %v650_v12 }
  0x2a   :  { %414 = vmatpush.msrb.mxu0 %v28_v0  ;;  %437 = vmatpush.msrb.mxu1 %v29_v1 }
  0x2d   :  { %575 = vmatmul.msk.f32.vlgmr.msra.gmra.mxu0 %vm116_vm0, %v650_v12  ;;  %577 = vmatmul.msk.f32.vlgmr.msra.gmra.mxu1 %vm116_vm0, %v650_v12 }
  0x31   :  { %580 = vmatmul.msk.f32.gmra.mxu2 %vm116_vm0, %v699_v25  ;;  %582 = vmatmul.msk.f32.gmra.mxu3 %vm116_vm0, %v699_v25 }
  0x35   :  { %576 = vmatmul.msk.f32.gmra.mxu0 %vm116_vm0, %v699_v25  ;;  %578 = vmatmul.msk.f32.gmra.mxu1 %vm116_vm0, %v699_v25 }
  0x39   :  { %587 = vmatmul.msk.f32.vlgmr.msrb.gmra.mxu2 %vm116_vm0, %v650_v12  ;;  %589 = vmatmul.msk.f32.vlgmr.msrb.gmra.mxu3 %vm116_vm0, %v650_v12 }
  0x3d   :  { %583 = vmatmul.msk.f32.vlgmr.msrb.gmra.mxu0 %vm116_vm0, %v650_v12  ;;  %585 = vmatmul.msk.f32.vlgmr.msrb.gmra.mxu1 %vm116_vm0, %v650_v12 }
  0x41   :  { %588 = vmatmul.msk.f32.gmra.mxu2 %vm116_vm0, %v699_v25  ;;  %590 = vmatmul.msk.f32.gmra.mxu3 %vm116_vm0, %v699_v25 }
  0x45   :  { %584 = vmatmul.msk.f32.gmra.mxu0 %vm116_vm0, %v699_v25  ;;  %586 = vmatmul.msk.f32.gmra.mxu1 %vm116_vm0, %v699_v25 }
  0x8a   :  { %v140_v7 = vpop.f32.mrf.mxu0  ;;  %v163_v8 = vpop.f32.mrf.mxu1 }
  0x8b   :  { %v141_v9 = vadd.f32 %v140_v7, %v84_v3  ;;  %v164_v10 = vadd.f32 %v163_v8, %v85_v4 }
  0x8c   :  { %v186_v11 = vpop.f32.mrf.mxu2  ;;  %v209_v12 = vpop.f32.mrf.mxu3 }
  0x8d   :  { %v187_v13 = vadd.f32 %v186_v11, %v86_v5  ;;  %v210_v14 = vadd.f32 %v209_v12, %v87_v6  ;;  %v491_v15 = vmax.f32 %v141_v9, 0.0  ;;  %v492_v16 = vmax.f32 %v164_v10, 0.0 }
  0x8f   :  { %v493_v17 = vmax.f32 %v187_v13, 0.0  ;;  %v494_v18 = vmax.f32 %v210_v14, 0.0  ;;  %523 = vst [vmem:[%s1002_s3] sm:$0xff] %v491_v15 }
  0x90   :  { %524 = vst [vmem:[%s1002_s3 + $0x8] sm:$0xff] %v492_v16 }
  0x91   :  { %525 = vst [vmem:[%s1002_s3 + $0x10] sm:$0xff] %v493_v17 }
  0x92   :  { %526 = vst [vmem:[%s1002_s3 + $0x18] sm:$0xff] %v494_v18  ;;  %v143_v19 = vpop.f32.mrf.mxu0  ;;  %v166_v20 = vpop.f32.mrf.mxu1 }
  0x93   :  { %v144_v21 = vadd.f32 %v143_v19, %v84_v3  ;;  %v167_v22 = vadd.f32 %v166_v20, %v85_v4 }
  0x94   :  { %v189_v23 = vpop.f32.mrf.mxu2  ;;  %v212_v24 = vpop.f32.mrf.mxu3 }
  0x95   :  { %v190_v25 = vadd.f32 %v189_v23, %v86_v5  ;;  %v213_v26 = vadd.f32 %v212_v24, %v87_v6  ;;  %v507_v27 = vmax.f32 %v144_v21, 0.0  ;;  %v508_v28 = vmax.f32 %v167_v22, 0.0 }
  0x96   :  { %v96_v24 = vperm.slane %v929_v55, 4 }
  0x97   :  { %v509_v29 = vmax.f32 %v190_v25, 0.0  ;;  %v510_v30 = vmax.f32 %v213_v26, 0.0  ;;  %539 = vst [vmem:[%s1002_s3 + $0x80] sm:$0xff] %v507_v27  ;;  %v97_v25 = vperm.slane %v929_v55, 5  ;;  %v98_v26 = vperm.slane %v929_v55, 6 }
  0x98   :  { %540 = vst [vmem:[%s1002_s3 + $0x88] sm:$0xff] %v508_v28  ;;  %v99_v27 = vperm.slane %v929_v55, 7 }
  0x99   :  { %541 = vst [vmem:[%s1002_s3 + $0x90] sm:$0xff] %v509_v29 }
  0x9a   :  { %542 = vst [vmem:[%s1002_s3 + $0x98] sm:$0xff] %v510_v30  ;;  %v232_v35 = vpop.f32.mrf.mxu0  ;;  %v255_v36 = vpop.f32.mrf.mxu1 }
  0x9b   :  { %v233_v37 = vadd.f32 %v232_v35, %v88_v31  ;;  %v256_v38 = vadd.f32 %v255_v36, %v89_v32 }
  0x9c   :  { %v278_v39 = vpop.f32.mrf.mxu2  ;;  %v301_v40 = vpop.f32.mrf.mxu3 }
  0x9d   :  { %v279_v41 = vadd.f32 %v278_v39, %v90_v33  ;;  %v302_v42 = vadd.f32 %v301_v40, %v91_v34  ;;  %v495_v43 = vmax.f32 %v233_v37, 0.0  ;;  %v496_v44 = vmax.f32 %v256_v38, 0.0 }
  0x9f   :  { %v497_v45 = vmax.f32 %v279_v41, 0.0  ;;  %v498_v46 = vmax.f32 %v302_v42, 0.0  ;;  %527 = vst [vmem:[%s1002_s3 + $0x20] sm:$0xff] %v495_v43 }
  0xa0   :  { %528 = vst [vmem:[%s1002_s3 + $0x28] sm:$0xff] %v496_v44 }
  0xa1   :  { %529 = vst [vmem:[%s1002_s3 + $0x30] sm:$0xff] %v497_v45 }
  0xa2   :  { %530 = vst [vmem:[%s1002_s3 + $0x38] sm:$0xff] %v498_v46  ;;  %v235_v47 = vpop.f32.mrf.mxu0  ;;  %v258_v48 = vpop.f32.mrf.mxu1 }
  0xa3   :  { %v236_v49 = vadd.f32 %v235_v47, %v88_v31  ;;  %v259_v50 = vadd.f32 %v258_v48, %v89_v32 }
  0xa4   :  { %v281_v51 = vpop.f32.mrf.mxu2  ;;  %v304_v52 = vpop.f32.mrf.mxu3 }
  0xa5   :  { %v282_v53 = vadd.f32 %v281_v51, %v90_v33  ;;  %v305_v54 = vadd.f32 %v304_v52, %v91_v34  ;;  %v511_v56 = vmax.f32 %v236_v49, 0.0  ;;  %v512_v57 = vmax.f32 %v259_v50, 0.0 }
  0xa7   :  { %v513_v58 = vmax.f32 %v282_v53, 0.0  ;;  %v514_v59 = vmax.f32 %v305_v54, 0.0  ;;  %543 = vst [vmem:[%s1002_s3 + $0xa0] sm:$0xff] %v511_v56 }
  0xa8   :  { %544 = vst [vmem:[%s1002_s3 + $0xa8] sm:$0xff] %v512_v57 }
  0xa9   :  { %545 = vst [vmem:[%s1002_s3 + $0xb0] sm:$0xff] %v513_v58 }
  0xaa   :  { %546 = vst [vmem:[%s1002_s3 + $0xb8] sm:$0xff] %v514_v59  ;;  %v324_v0 = vpop.f32.mrf.mxu0  ;;  %v347_v1 = vpop.f32.mrf.mxu1 }
  0xab   :  { %v325_v2 = vadd.f32 %v324_v0, %v92_v60  ;;  %v348_v3 = vadd.f32 %v347_v1, %v93_v61 }
  0xac   :  { %v370_v4 = vpop.f32.mrf.mxu2  ;;  %v393_v5 = vpop.f32.mrf.mxu3 }
  0xad   :  { %v371_v6 = vadd.f32 %v370_v4, %v94_v62  ;;  %v394_v7 = vadd.f32 %v393_v5, %v95_v63  ;;  %v499_v8 = vmax.f32 %v325_v2, 0.0  ;;  %v500_v9 = vmax.f32 %v348_v3, 0.0 }
  0xaf   :  { %v501_v10 = vmax.f32 %v371_v6, 0.0  ;;  %v502_v11 = vmax.f32 %v394_v7, 0.0  ;;  %531 = vst [vmem:[%s1002_s3 + $0x40] sm:$0xff] %v499_v8 }
  0xb0   :  { %532 = vst [vmem:[%s1002_s3 + $0x48] sm:$0xff] %v500_v9 }
  0xb1   :  { %533 = vst [vmem:[%s1002_s3 + $0x50] sm:$0xff] %v501_v10 }
  0xb2   :  { %534 = vst [vmem:[%s1002_s3 + $0x58] sm:$0xff] %v502_v11  ;;  %v327_v12 = vpop.f32.mrf.mxu0  ;;  %v350_v13 = vpop.f32.mrf.mxu1 }
  0xb3   :  { %v328_v14 = vadd.f32 %v327_v12, %v92_v60  ;;  %v351_v15 = vadd.f32 %v350_v13, %v93_v61 }
  0xb4   :  { %v373_v16 = vpop.f32.mrf.mxu2  ;;  %v396_v17 = vpop.f32.mrf.mxu3 }
  0xb5   :  { %v374_v18 = vadd.f32 %v373_v16, %v94_v62  ;;  %v397_v19 = vadd.f32 %v396_v17, %v95_v63  ;;  %v515_v20 = vmax.f32 %v328_v14, 0.0  ;;  %v516_v21 = vmax.f32 %v351_v15, 0.0 }
  0xb7   :  { %v517_v22 = vmax.f32 %v374_v18, 0.0  ;;  %v518_v23 = vmax.f32 %v397_v19, 0.0  ;;  %547 = vst [vmem:[%s1002_s3 + $0xc0] sm:$0xff] %v515_v20 }
  0xb8   :  { %548 = vst [vmem:[%s1002_s3 + $0xc8] sm:$0xff] %v516_v21 }
  0xb9   :  { %549 = vst [vmem:[%s1002_s3 + $0xd0] sm:$0xff] %v517_v22 }
  0xba   :  { %550 = vst [vmem:[%s1002_s3 + $0xd8] sm:$0xff] %v518_v23  ;;  %v416_v28 = vpop.f32.mrf.mxu0  ;;  %v439_v29 = vpop.f32.mrf.mxu1 }
  0xbb   :  { %v417_v30 = vadd.f32 %v416_v28, %v96_v24  ;;  %v440_v31 = vadd.f32 %v439_v29, %v97_v25 }
  0xbc   :  { %v462_v32 = vpop.f32.mrf.mxu2  ;;  %v485_v33 = vpop.f32.mrf.mxu3 }
  0xbd   :  { %v463_v34 = vadd.f32 %v462_v32, %v98_v26  ;;  %v486_v35 = vadd.f32 %v485_v33, %v99_v27  ;;  %v503_v36 = vmax.f32 %v417_v30, 0.0  ;;  %v504_v37 = vmax.f32 %v440_v31, 0.0 }
  0xbf   :  { %v505_v38 = vmax.f32 %v463_v34, 0.0  ;;  %v506_v39 = vmax.f32 %v486_v35, 0.0  ;;  %535 = vst [vmem:[%s1002_s3 + $0x60] sm:$0xff] %v503_v36 }
  0xc0   :  { %536 = vst [vmem:[%s1002_s3 + $0x68] sm:$0xff] %v504_v37 }
  0xc1   :  { %537 = vst [vmem:[%s1002_s3 + $0x70] sm:$0xff] %v505_v38 }
  0xc2   :  { %538 = vst [vmem:[%s1002_s3 + $0x78] sm:$0xff] %v506_v39  ;;  %v419_v40 = vpop.f32.mrf.mxu0  ;;  %v442_v41 = vpop.f32.mrf.mxu1 }
  0xc3   :  { %v420_v42 = vadd.f32 %v419_v40, %v96_v24  ;;  %v443_v43 = vadd.f32 %v442_v41, %v97_v25 }
  0xc4   :  { %v465_v44 = vpop.f32.mrf.mxu2  ;;  %v488_v45 = vpop.f32.mrf.mxu3 }
  0xc5   :  { %v466_v46 = vadd.f32 %v465_v44, %v98_v26  ;;  %v489_v47 = vadd.f32 %v488_v45, %v99_v27  ;;  %v519_v48 = vmax.f32 %v420_v42, 0.0  ;;  %v520_v49 = vmax.f32 %v443_v43, 0.0 }
  0xc7   :  { %v521_v50 = vmax.f32 %v466_v46, 0.0  ;;  %v522_v51 = vmax.f32 %v489_v47, 0.0  ;;  %551 = vst [vmem:[%s1002_s3 + $0xe0] sm:$0xff] %v519_v48 }
  0xc8   :  { %552 = vst [vmem:[%s1002_s3 + $0xe8] sm:$0xff] %v520_v49 }
  0xc9   :  { %553 = vst [vmem:[%s1002_s3 + $0xf0] sm:$0xff] %v521_v50 }
  0xca   :  { %554 = vst [vmem:[%s1002_s3 + $0xf8] sm:$0xff] %v522_v51 }

// kernel: general_prompt_encoder_decoder.39
= control target key start
LH: loop header
LB: loop body
LE: loop exit
PB: predicated region body
PF: predicated region fallthrough
CT: control target
= control target key end

     0   :  { %s158_s0 = inlined_call_operand.vmem [shape: f32[16,32], index: 0, kind: input, shape index: {}]   ;;  %s159_s1 = inlined_call_operand.vmem [shape: f32[32,128], index: 1, kind: input, shape index: {}]   ;;  %s160_s2 = inlined_call_operand.vmem [shape: f32[1,128], index: 2, kind: input, shape index: {}]   ;;  %s161_s3 = inlined_call_operand.hbm [shape: f32[16,128], index: 3, kind: output, shape index: {}]  }
   0x1   :  { %v20_v0 = vld [vmem:[%s159_s1 + $0x18] sm:$0xff]  ;;  %v19_v1 = vld [vmem:[%s159_s1 + $0x10] sm:$0xff]  ;;  %v18_v2 = vld [vmem:[%s159_s1 + $0x8] sm:$0xff] }
   0x2   :  { %44 = vmatpush.msra.mxu0 %v20_v0  ;;  %77 = vmatpush.msra.mxu1 %v20_v0 }
   0x3   :  { %8 = vsyncpa [#allocation3], 0  ;;  %v17_v3 = vld [vmem:[%s159_s1] sm:$0xff]  ;;  %vm25_vm0 = vcmask 261120   ;;  %v16_v5 = vld [vmem:[%s158_s0 + $0x8] sm:$0xff]  ;;  %s111_s1 = smov [#allocation2]  }
   0x4   :  { %45 = vmatpush.msra.mxu0 %v19_v1  ;;  %78 = vmatpush.msra.mxu1 %v19_v1  ;;  %v15_v4 = vld [vmem:[%s158_s0] sm:$0xff]  ;;  %s61_s26 = sshll.u32 %s111_s1, 4  ;;  %s63_s29 = sshll.u32 %s161_s3, 4  ;;  %s62_s26 = int_to_ptr.vmem [resolvable:$true] %s61_s26  ;;  %s64_s29 = int_to_ptr.hbm [resolvable:$true] %s63_s29 }
   0x5   :  { %v84_v6 = vld [vmem:[%s160_s2] ss:$0 sm:$0xff]  ;;  %s112_s0 = smov 128   ;;  %s113_s30 = smov 8  }
   0x6   :  { %46 = vmatpush.msra.mxu0 %v18_v2  ;;  %79 = vmatpush.msra.mxu1 %v18_v2 }
   0x8   :  { %47 = vmatpush.msra.mxu0 %v17_v3  ;;  %80 = vmatpush.msra.mxu1 %v17_v3 }
   0x9   :  { %75 = vmatmul.msk.f32.vlgmr.msra.gmra.mxu0 %vm25_vm0, %v15_v4  ;;  %76 = vmatmul.msk.f32.vlgmr.msra.gmra.mxu1 %vm25_vm0, %v16_v5 }
  0x86   :  { %v49_v7 = vpop.f32.mrf.mxu0  ;;  %v52_v8 = vpop.f32.mrf.mxu1 }
  0x87   :  { %v50_v9 = vadd.f32 %v84_v6, %v49_v7  ;;  %v53_v10 = vadd.f32 %v84_v6, %v52_v8 }
  0x89   :  { %55 = vst [vmem:[#allocation2] sm:$0xff] %v50_v9 }
  0x8a   :  { %56 = vst [vmem:[#allocation2 + $0x8] sm:$0xff] %v53_v10 }
  0x8b   :  { %69 = dma.vmem_to_hbm [thread:$0]  %s62_s26, 256, %s64_s29, [#allocation3], %s112_s0, %s112_s0, %s113_s30  }
  0x8c   :  { %109 = dma.done.wait [#allocation3], 256  }
  0x8d   :  { %110 = vsyncadd [#allocation3], 4294967040 }
  0x8e   :  { %74 = vsyncpa [#allocation3], 1 }

// kernel: general_prompt_encoder_decoder.25
= control target key start
LH: loop header
LB: loop body
LE: loop exit
PB: predicated region body
PF: predicated region fallthrough
CT: control target
= control target key end

     0   :  { %s1574_s1 = inlined_call_operand.vmem [shape: f32[2048,128], index: 1, kind: input, shape index: {}]   ;;  %s1575_s0 = inlined_call_operand.vmem [shape: f32[16,2048], index: 0, kind: input, shape index: {}]   ;;  %s1576_s2 = inlined_call_operand.vmem [shape: f32[1,128], index: 2, kind: input, shape index: {}]   ;;  %s1577_s3 = inlined_call_operand.vmem [shape: f32[16,128], index: 3, kind: output, shape index: {}]  }
   0x1   :  { %v61_v0 = vld [vmem:[%s1574_s1 + $0x78] sm:$0xff]  ;;  %v60_v2 = vld [vmem:[%s1574_s1 + $0x70] sm:$0xff]  ;;  %v59_v6 = vld [vmem:[%s1574_s1 + $0x68] sm:$0xff] }
   0x2   :  { %v93_v1 = vld [vmem:[%s1574_s1 + $0x178] sm:$0xff]  ;;  %306 = vmatpush.msra.mxu0 %v61_v0  ;;  %v92_v4 = vld [vmem:[%s1574_s1 + $0x170] sm:$0xff]  ;;  %v91_v8 = vld [vmem:[%s1574_s1 + $0x168] sm:$0xff] }
   0x3   :  { %352 = vmatpush.msra.mxu2 %v93_v1  ;;  %v77_v3 = vld [vmem:[%s1574_s1 + $0xf8] sm:$0xff]  ;;  %v76_v7 = vld [vmem:[%s1574_s1 + $0xf0] sm:$0xff]  ;;  %v75_v10 = vld [vmem:[%s1574_s1 + $0xe8] sm:$0xff] }
   0x4   :  { %v109_v5 = vld [vmem:[%s1574_s1 + $0x1f8] sm:$0xff]  ;;  %329 = vmatpush.msra.mxu1 %v77_v3  ;;  %307 = vmatpush.msra.mxu0 %v60_v2  ;;  %v108_v9 = vld [vmem:[%s1574_s1 + $0x1f0] sm:$0xff]  ;;  %v58_v11 = vld [vmem:[%s1574_s1 + $0x60] sm:$0xff] }
   0x5   :  { %375 = vmatpush.msra.mxu3 %v109_v5  ;;  %353 = vmatpush.msra.mxu2 %v92_v4  ;;  %v90_v12 = vld [vmem:[%s1574_s1 + $0x160] sm:$0xff]  ;;  %v107_v13 = vld [vmem:[%s1574_s1 + $0x1e8] sm:$0xff]  ;;  %v57_v16 = vld [vmem:[%s1574_s1 + $0x58] sm:$0xff] }
   0x6   :  { %330 = vmatpush.msra.mxu1 %v76_v7  ;;  %308 = vmatpush.msra.mxu0 %v59_v6  ;;  %v74_v14 = vld [vmem:[%s1574_s1 + $0xe0] sm:$0xff]  ;;  %v89_v17 = vld [vmem:[%s1574_s1 + $0x158] sm:$0xff]  ;;  %v56_v20 = vld [vmem:[%s1574_s1 + $0x50] sm:$0xff] }
   0x7   :  { %376 = vmatpush.msra.mxu3 %v108_v9  ;;  %354 = vmatpush.msra.mxu2 %v91_v8  ;;  %v106_v15 = vld [vmem:[%s1574_s1 + $0x1e0] sm:$0xff]  ;;  %v73_v18 = vld [vmem:[%s1574_s1 + $0xd8] sm:$0xff]  ;;  %v88_v21 = vld [vmem:[%s1574_s1 + $0x150] sm:$0xff] }
   0x8   :  { %331 = vmatpush.msra.mxu1 %v75_v10  ;;  %309 = vmatpush.msra.mxu0 %v58_v11  ;;  %v105_v19 = vld [vmem:[%s1574_s1 + $0x1d8] sm:$0xff]  ;;  %v72_v22 = vld [vmem:[%s1574_s1 + $0xd0] sm:$0xff]  ;;  %v55_v24 = vld [vmem:[%s1574_s1 + $0x48] sm:$0xff] }
   0x9   :  { %377 = vmatpush.msra.mxu3 %v107_v13  ;;  %355 = vmatpush.msra.mxu2 %v90_v12  ;;  %v104_v23 = vld [vmem:[%s1574_s1 + $0x1d0] sm:$0xff]  ;;  %v87_v25 = vld [vmem:[%s1574_s1 + $0x148] sm:$0xff]  ;;  %v54_v28 = vld [vmem:[%s1574_s1 + $0x40] sm:$0xff] }
   0xa   :  { %332 = vmatpush.msra.mxu1 %v74_v14  ;;  %310 = vmatpush.msra.mxu0 %v57_v16  ;;  %v71_v26 = vld [vmem:[%s1574_s1 + $0xc8] sm:$0xff]  ;;  %v86_v29 = vld [vmem:[%s1574_s1 + $0x140] sm:$0xff]  ;;  %v53_v32 = vld [vmem:[%s1574_s1 + $0x38] sm:$0xff] }
   0xb   :  { %378 = vmatpush.msra.mxu3 %v106_v15  ;;  %356 = vmatpush.msra.mxu2 %v89_v17  ;;  %v103_v27 = vld [vmem:[%s1574_s1 + $0x1c8] sm:$0xff]  ;;  %v70_v30 = vld [vmem:[%s1574_s1 + $0xc0] sm:$0xff]  ;;  %v85_v33 = vld [vmem:[%s1574_s1 + $0x138] sm:$0xff] }
   0xc   :  { %333 = vmatpush.msra.mxu1 %v73_v18  ;;  %311 = vmatpush.msra.mxu0 %v56_v20  ;;  %v102_v31 = vld [vmem:[%s1574_s1 + $0x1c0] sm:$0xff]  ;;  %v69_v34 = vld [vmem:[%s1574_s1 + $0xb8] sm:$0xff]  ;;  %v52_v36 = vld [vmem:[%s1574_s1 + $0x30] sm:$0xff] }
   0xd   :  { %379 = vmatpush.msra.mxu3 %v105_v19  ;;  %357 = vmatpush.msra.mxu2 %v88_v21  ;;  %v101_v35 = vld [vmem:[%s1574_s1 + $0x1b8] sm:$0xff]  ;;  %v84_v37 = vld [vmem:[%s1574_s1 + $0x130] sm:$0xff]  ;;  %v51_v40 = vld [vmem:[%s1574_s1 + $0x28] sm:$0xff] }
   0xe   :  { %334 = vmatpush.msra.mxu1 %v72_v22  ;;  %312 = vmatpush.msra.mxu0 %v55_v24  ;;  %v68_v38 = vld [vmem:[%s1574_s1 + $0xb0] sm:$0xff]  ;;  %v83_v41 = vld [vmem:[%s1574_s1 + $0x128] sm:$0xff]  ;;  %v50_v44 = vld [vmem:[%s1574_s1 + $0x20] sm:$0xff] }
   0xf   :  { %380 = vmatpush.msra.mxu3 %v104_v23  ;;  %358 = vmatpush.msra.mxu2 %v87_v25  ;;  %v100_v39 = vld [vmem:[%s1574_s1 + $0x1b0] sm:$0xff]  ;;  %v67_v42 = vld [vmem:[%s1574_s1 + $0xa8] sm:$0xff]  ;;  %v82_v45 = vld [vmem:[%s1574_s1 + $0x120] sm:$0xff] }
  0x10   :  { %335 = vmatpush.msra.mxu1 %v71_v26  ;;  %313 = vmatpush.msra.mxu0 %v54_v28  ;;  %v99_v43 = vld [vmem:[%s1574_s1 + $0x1a8] sm:$0xff]  ;;  %v66_v46 = vld [vmem:[%s1574_s1 + $0xa0] sm:$0xff]  ;;  %v49_v48 = vld [vmem:[%s1574_s1 + $0x18] sm:$0xff] }
  0x11   :  { %381 = vmatpush.msra.mxu3 %v103_v27  ;;  %359 = vmatpush.msra.mxu2 %v86_v29  ;;  %v98_v47 = vld [vmem:[%s1574_s1 + $0x1a0] sm:$0xff]  ;;  %v81_v49 = vld [vmem:[%s1574_s1 + $0x118] sm:$0xff]  ;;  %v48_v52 = vld [vmem:[%s1574_s1 + $0x10] sm:$0xff] }
  0x12   :  { %336 = vmatpush.msra.mxu1 %v70_v30  ;;  %314 = vmatpush.msra.mxu0 %v53_v32  ;;  %v65_v50 = vld [vmem:[%s1574_s1 + $0x98] sm:$0xff]  ;;  %v80_v53 = vld [vmem:[%s1574_s1 + $0x110] sm:$0xff]  ;;  %v47_v56 = vld [vmem:[%s1574_s1 + $0x8] sm:$0xff] }
  0x13   :  { %382 = vmatpush.msra.mxu3 %v102_v31  ;;  %360 = vmatpush.msra.mxu2 %v85_v33  ;;  %v97_v51 = vld [vmem:[%s1574_s1 + $0x198] sm:$0xff]  ;;  %v64_v54 = vld [vmem:[%s1574_s1 + $0x90] sm:$0xff]  ;;  %v79_v57 = vld [vmem:[%s1574_s1 + $0x108] sm:$0xff] }
  0x14   :  { %337 = vmatpush.msra.mxu1 %v69_v34  ;;  %315 = vmatpush.msra.mxu0 %v52_v36  ;;  %v96_v55 = vld [vmem:[%s1574_s1 + $0x190] sm:$0xff]  ;;  %v63_v58 = vld [vmem:[%s1574_s1 + $0x88] sm:$0xff]  ;;  %v46_v60 = vld [vmem:[%s1574_s1] sm:$0xff] }
  0x15   :  { %383 = vmatpush.msra.mxu3 %v101_v35  ;;  %361 = vmatpush.msra.mxu2 %v84_v37  ;;  %v95_v59 = vld [vmem:[%s1574_s1 + $0x188] sm:$0xff]  ;;  %v78_v61 = vld [vmem:[%s1574_s1 + $0x100] sm:$0xff]  ;;  %v125_v62 = vld [vmem:[%s1574_s1 + $0x278] sm:$0xff] }
  0x16   :  { %338 = vmatpush.msra.mxu1 %v68_v38  ;;  %316 = vmatpush.msra.mxu0 %v51_v40  ;;  %v157_v63 = vld [vmem:[%s1574_s1 + $0x378] sm:$0xff]  ;;  %v62_v0 = vld [vmem:[%s1574_s1 + $0x80] sm:$0xff]  ;;  %v124_v2 = vld [vmem:[%s1574_s1 + $0x270] sm:$0xff] }
  0x17   :  { %384 = vmatpush.msra.mxu3 %v100_v39  ;;  %362 = vmatpush.msra.mxu2 %v83_v41  ;;  %v94_v1 = vld [vmem:[%s1574_s1 + $0x180] sm:$0xff]  ;;  %v141_v3 = vld [vmem:[%s1574_s1 + $0x2f8] sm:$0xff]  ;;  %v156_v4 = vld [vmem:[%s1574_s1 + $0x370] sm:$0xff] }
  0x18   :  { %339 = vmatpush.msra.mxu1 %v67_v42  ;;  %317 = vmatpush.msra.mxu0 %v50_v44  ;;  %v173_v5 = vld [vmem:[%s1574_s1 + $0x3f8] sm:$0xff]  ;;  %v123_v6 = vld [vmem:[%s1574_s1 + $0x268] sm:$0xff]  ;;  %v140_v7 = vld [vmem:[%s1574_s1 + $0x2f0] sm:$0xff] }
  0x19   :  { %385 = vmatpush.msra.mxu3 %v99_v43  ;;  %363 = vmatpush.msra.mxu2 %v82_v45  ;;  %v155_v8 = vld [vmem:[%s1574_s1 + $0x368] sm:$0xff]  ;;  %v172_v9 = vld [vmem:[%s1574_s1 + $0x3f0] sm:$0xff]  ;;  %v122_v10 = vld [vmem:[%s1574_s1 + $0x260] sm:$0xff] }
  0x1a   :  { %340 = vmatpush.msra.mxu1 %v66_v46  ;;  %318 = vmatpush.msra.mxu0 %v49_v48  ;;  %v139_v11 = vld [vmem:[%s1574_s1 + $0x2e8] sm:$0xff]  ;;  %v154_v12 = vld [vmem:[%s1574_s1 + $0x360] sm:$0xff]  ;;  %v121_v14 = vld [vmem:[%s1574_s1 + $0x258] sm:$0xff] }
  0x1b   :  { %386 = vmatpush.msra.mxu3 %v98_v47  ;;  %364 = vmatpush.msra.mxu2 %v81_v49  ;;  %v171_v13 = vld [vmem:[%s1574_s1 + $0x3e8] sm:$0xff]  ;;  %v138_v15 = vld [vmem:[%s1574_s1 + $0x2e0] sm:$0xff]  ;;  %v153_v16 = vld [vmem:[%s1574_s1 + $0x358] sm:$0xff] }
  0x1c   :  { %341 = vmatpush.msra.mxu1 %v65_v50  ;;  %319 = vmatpush.msra.mxu0 %v48_v52  ;;  %v170_v17 = vld [vmem:[%s1574_s1 + $0x3e0] sm:$0xff]  ;;  %v120_v18 = vld [vmem:[%s1574_s1 + $0x250] sm:$0xff]  ;;  %v137_v19 = vld [vmem:[%s1574_s1 + $0x2d8] sm:$0xff] }
  0x1d   :  { %387 = vmatpush.msra.mxu3 %v97_v51  ;;  %365 = vmatpush.msra.mxu2 %v80_v53  ;;  %v152_v20 = vld [vmem:[%s1574_s1 + $0x350] sm:$0xff]  ;;  %v169_v21 = vld [vmem:[%s1574_s1 + $0x3d8] sm:$0xff]  ;;  %v119_v22 = vld [vmem:[%s1574_s1 + $0x248] sm:$0xff] }
  0x1e   :  { %342 = vmatpush.msra.mxu1 %v64_v54  ;;  %320 = vmatpush.msra.mxu0 %v47_v56  ;;  %v136_v23 = vld [vmem:[%s1574_s1 + $0x2d0] sm:$0xff]  ;;  %v151_v24 = vld [vmem:[%s1574_s1 + $0x348] sm:$0xff]  ;;  %v118_v26 = vld [vmem:[%s1574_s1 + $0x240] sm:$0xff] }
  0x1f   :  { %388 = vmatpush.msra.mxu3 %v96_v55  ;;  %366 = vmatpush.msra.mxu2 %v79_v57  ;;  %v168_v25 = vld [vmem:[%s1574_s1 + $0x3d0] sm:$0xff]  ;;  %v135_v27 = vld [vmem:[%s1574_s1 + $0x2c8] sm:$0xff]  ;;  %v150_v28 = vld [vmem:[%s1574_s1 + $0x340] sm:$0xff] }
  0x20   :  { %343 = vmatpush.msra.mxu1 %v63_v58  ;;  %321 = vmatpush.msra.mxu0 %v46_v60  ;;  %v167_v29 = vld [vmem:[%s1574_s1 + $0x3c8] sm:$0xff]  ;;  %v117_v30 = vld [vmem:[%s1574_s1 + $0x238] sm:$0xff]  ;;  %v134_v31 = vld [vmem:[%s1574_s1 + $0x2c0] sm:$0xff] }
  0x21   :  { %389 = vmatpush.msra.mxu3 %v95_v59  ;;  %367 = vmatpush.msra.mxu2 %v78_v61  ;;  %v149_v32 = vld [vmem:[%s1574_s1 + $0x338] sm:$0xff]  ;;  %v166_v33 = vld [vmem:[%s1574_s1 + $0x3c0] sm:$0xff]  ;;  %v116_v34 = vld [vmem:[%s1574_s1 + $0x230] sm:$0xff] }
  0x22   :  { %398 = vmatpush.msrb.mxu0 %v125_v62  ;;  %344 = vmatpush.msra.mxu1 %v62_v0  ;;  %v133_v35 = vld [vmem:[%s1574_s1 + $0x2b8] sm:$0xff]  ;;  %v148_v36 = vld [vmem:[%s1574_s1 + $0x330] sm:$0xff]  ;;  %v115_v38 = vld [vmem:[%s1574_s1 + $0x228] sm:$0xff] }
  0x23   :  { %444 = vmatpush.msrb.mxu2 %v157_v63  ;;  %390 = vmatpush.msra.mxu3 %v94_v1  ;;  %v165_v37 = vld [vmem:[%s1574_s1 + $0x3b8] sm:$0xff]  ;;  %v132_v39 = vld [vmem:[%s1574_s1 + $0x2b0] sm:$0xff]  ;;  %v147_v40 = vld [vmem:[%s1574_s1 + $0x328] sm:$0xff] }
  0x24   :  { %399 = vmatpush.msrb.mxu0 %v124_v2  ;;  %421 = vmatpush.msrb.mxu1 %v141_v3  ;;  %v164_v41 = vld [vmem:[%s1574_s1 + $0x3b0] sm:$0xff]  ;;  %v114_v42 = vld [vmem:[%s1574_s1 + $0x220] sm:$0xff]  ;;  %v131_v43 = vld [vmem:[%s1574_s1 + $0x2a8] sm:$0xff] }
  0x25   :  { %445 = vmatpush.msrb.mxu2 %v156_v4  ;;  %467 = vmatpush.msrb.mxu3 %v173_v5  ;;  %v146_v44 = vld [vmem:[%s1574_s1 + $0x320] sm:$0xff]  ;;  %v163_v45 = vld [vmem:[%s1574_s1 + $0x3a8] sm:$0xff]  ;;  %v16_v46 = vld [vmem:[%s1575_s0 + $0x10] sm:$0xff] }
  0x26   :  { %400 = vmatpush.msrb.mxu0 %v123_v6  ;;  %422 = vmatpush.msrb.mxu1 %v140_v7  ;;  %v113_v47 = vld [vmem:[%s1574_s1 + $0x218] sm:$0xff]  ;;  %v130_v48 = vld [vmem:[%s1574_s1 + $0x2a0] sm:$0xff]  ;;  %v112_v53 = vld [vmem:[%s1574_s1 + $0x210] sm:$0xff] }
  0x27   :  { %446 = vmatpush.msrb.mxu2 %v155_v8  ;;  %468 = vmatpush.msrb.mxu3 %v172_v9  ;;  %v145_v49 = vld [vmem:[%s1574_s1 + $0x318] sm:$0xff]  ;;  %v162_v50 = vld [vmem:[%s1574_s1 + $0x3a0] sm:$0xff]  ;;  %v144_v55 = vld [vmem:[%s1574_s1 + $0x310] sm:$0xff] }
  0x28   :  { %401 = vmatpush.msrb.mxu0 %v122_v10  ;;  %423 = vmatpush.msrb.mxu1 %v139_v11  ;;  %v14_v51 = vld [vmem:[%s1575_s0] sm:$0xff]  ;;  %v17_v52 = vld [vmem:[%s1575_s0 + $0x18] sm:$0xff]  ;;  %v15_v57 = vld [vmem:[%s1575_s0 + $0x8] sm:$0xff] }
  0x29   :  { %447 = vmatpush.msrb.mxu2 %v154_v12  ;;  %469 = vmatpush.msrb.mxu3 %v171_v13  ;;  %v129_v54 = vld [vmem:[%s1574_s1 + $0x298] sm:$0xff]  ;;  %v111_v58 = vld [vmem:[%s1574_s1 + $0x208] sm:$0xff]  ;;  %v128_v59 = vld [vmem:[%s1574_s1 + $0x290] sm:$0xff] }
  0x2a   :  { %402 = vmatpush.msrb.mxu0 %v121_v14  ;;  %424 = vmatpush.msrb.mxu1 %v138_v15  ;;  %v161_v56 = vld [vmem:[%s1574_s1 + $0x398] sm:$0xff]  ;;  %v143_v60 = vld [vmem:[%s1574_s1 + $0x308] sm:$0xff]  ;;  %v160_v61 = vld [vmem:[%s1574_s1 + $0x390] sm:$0xff] }
  0x2b   :  { %448 = vmatpush.msrb.mxu2 %v153_v16  ;;  %470 = vmatpush.msrb.mxu3 %v170_v17  ;;  %v110_v62 = vld [vmem:[%s1574_s1 + $0x200] sm:$0xff]  ;;  %v127_v63 = vld [vmem:[%s1574_s1 + $0x288] sm:$0xff]  ;;  %v32_v2 = vld [vmem:[%s1575_s0 + $0x90] sm:$0xff] }
  0x2c   :  { %403 = vmatpush.msrb.mxu0 %v120_v18  ;;  %425 = vmatpush.msrb.mxu1 %v137_v19  ;;  %v142_v0 = vld [vmem:[%s1574_s1 + $0x300] sm:$0xff]  ;;  %v159_v1 = vld [vmem:[%s1574_s1 + $0x388] sm:$0xff]  ;;  %v189_v3 = vld [vmem:[%s1574_s1 + $0x478] sm:$0xff] }
  0x2d   :  { %449 = vmatpush.msrb.mxu2 %v152_v20  ;;  %471 = vmatpush.msrb.mxu3 %v169_v21  ;;  %v221_v4 = vld [vmem:[%s1574_s1 + $0x578] sm:$0xff]  ;;  %v126_v5 = vld [vmem:[%s1574_s1 + $0x280] sm:$0xff]  ;;  %v188_v9 = vld [vmem:[%s1574_s1 + $0x470] sm:$0xff] }
  0x2e   :  { %404 = vmatpush.msrb.mxu0 %v119_v22  ;;  %426 = vmatpush.msrb.mxu1 %v136_v23  ;;  %v158_v6 = vld [vmem:[%s1574_s1 + $0x380] sm:$0xff]  ;;  %v33_v8 = vld [vmem:[%s1575_s0 + $0x98] sm:$0xff]  ;;  %v220_v11 = vld [vmem:[%s1574_s1 + $0x570] sm:$0xff] }
  0x2f   :  { %450 = vmatpush.msrb.mxu2 %v151_v24  ;;  %472 = vmatpush.msrb.mxu3 %v168_v25  ;;  %v30_v7 = vld [vmem:[%s1575_s0 + $0x80] sm:$0xff]  ;;  %v205_v10 = vld [vmem:[%s1574_s1 + $0x4f8] sm:$0xff]  ;;  %v31_v13 = vld [vmem:[%s1575_s0 + $0x88] sm:$0xff] }
  0x30   :  { %405 = vmatpush.msrb.mxu0 %v118_v26  ;;  %427 = vmatpush.msrb.mxu1 %v135_v27  ;;  %v237_v12 = vld [vmem:[%s1574_s1 + $0x5f8] sm:$0xff]  ;;  %v187_v14 = vld [vmem:[%s1574_s1 + $0x468] sm:$0xff]  ;;  %v204_v15 = vld [vmem:[%s1574_s1 + $0x4f0] sm:$0xff] }
  0x31   :  { %451 = vmatpush.msrb.mxu2 %v150_v28  ;;  %473 = vmatpush.msrb.mxu3 %v167_v29  ;;  %v219_v16 = vld [vmem:[%s1574_s1 + $0x568] sm:$0xff]  ;;  %v236_v17 = vld [vmem:[%s1574_s1 + $0x5f0] sm:$0xff]  ;;  %v186_v18 = vld [vmem:[%s1574_s1 + $0x460] sm:$0xff] }
  0x32   :  { %406 = vmatpush.msrb.mxu0 %v117_v30  ;;  %428 = vmatpush.msrb.mxu1 %v134_v31  ;;  %v203_v19 = vld [vmem:[%s1574_s1 + $0x4e8] sm:$0xff]  ;;  %v218_v20 = vld [vmem:[%s1574_s1 + $0x560] sm:$0xff]  ;;  %v20_v22 = vld [vmem:[%s1575_s0 + $0x30] sm:$0xff] }
  0x33   :  { %452 = vmatpush.msrb.mxu2 %v149_v32  ;;  %474 = vmatpush.msrb.mxu3 %v166_v33  ;;  %v235_v21 = vld [vmem:[%s1574_s1 + $0x5e8] sm:$0xff]  ;;  %v185_v23 = vld [vmem:[%s1574_s1 + $0x458] sm:$0xff]  ;;  %v202_v24 = vld [vmem:[%s1574_s1 + $0x4e0] sm:$0xff] }
  0x34   :  { %407 = vmatpush.msrb.mxu0 %v116_v34  ;;  %429 = vmatpush.msrb.mxu1 %v133_v35  ;;  %v217_v25 = vld [vmem:[%s1574_s1 + $0x558] sm:$0xff]  ;;  %v234_v26 = vld [vmem:[%s1574_s1 + $0x5e0] sm:$0xff]  ;;  %v184_v29 = vld [vmem:[%s1574_s1 + $0x450] sm:$0xff] }
  0x35   :  { %453 = vmatpush.msrb.mxu2 %v148_v36  ;;  %475 = vmatpush.msrb.mxu3 %v165_v37  ;;  %v18_v27 = vld [vmem:[%s1575_s0 + $0x20] sm:$0xff]  ;;  %v21_v28 = vld [vmem:[%s1575_s0 + $0x38] sm:$0xff]  ;;  %v216_v31 = vld [vmem:[%s1574_s1 + $0x550] sm:$0xff] }
  0x36   :  { %408 = vmatpush.msrb.mxu0 %v115_v38  ;;  %430 = vmatpush.msrb.mxu1 %v132_v39  ;;  %v201_v30 = vld [vmem:[%s1574_s1 + $0x4d8] sm:$0xff]  ;;  %v19_v33 = vld [vmem:[%s1575_s0 + $0x28] sm:$0xff]  ;;  %v200_v35 = vld [vmem:[%s1574_s1 + $0x4d0] sm:$0xff] }
  0x37   :  { %454 = vmatpush.msrb.mxu2 %v147_v40  ;;  %476 = vmatpush.msrb.mxu3 %v164_v41  ;;  %v233_v32 = vld [vmem:[%s1574_s1 + $0x5d8] sm:$0xff]  ;;  %v183_v34 = vld [vmem:[%s1574_s1 + $0x448] sm:$0xff]  ;;  %v232_v37 = vld [vmem:[%s1574_s1 + $0x5d0] sm:$0xff] }
  0x38   :  { %409 = vmatpush.msrb.mxu0 %v114_v42  ;;  %431 = vmatpush.msrb.mxu1 %v131_v43  ;;  %v215_v36 = vld [vmem:[%s1574_s1 + $0x548] sm:$0xff]  ;;  %v182_v38 = vld [vmem:[%s1574_s1 + $0x440] sm:$0xff]  ;;  %v181_v42 = vld [vmem:[%s1574_s1 + $0x438] sm:$0xff] }
  0x39   :  { %455 = vmatpush.msrb.mxu2 %v146_v44  ;;  %477 = vmatpush.msrb.mxu3 %v163_v45  ;;  %v199_v39 = vld [vmem:[%s1574_s1 + $0x4c8] sm:$0xff]  ;;  %v214_v40 = vld [vmem:[%s1574_s1 + $0x540] sm:$0xff]  ;;  %v213_v44 = vld [vmem:[%s1574_s1 + $0x538] sm:$0xff] }
  0x3a   :  { %368 = vmatmul.f32.vlgmr.msra.gmra.mxu2 %v16_v46  ;;  %410 = vmatpush.msrb.mxu0 %v113_v47  ;;  %v231_v41 = vld [vmem:[%s1574_s1 + $0x5c8] sm:$0xff]  ;;  %v198_v43 = vld [vmem:[%s1574_s1 + $0x4c0] sm:$0xff]  ;;  %v180_v46 = vld [vmem:[%s1574_s1 + $0x430] sm:$0xff] }
  0x3b   :  { %432 = vmatpush.msrb.mxu1 %v130_v48  ;;  %456 = vmatpush.msrb.mxu2 %v145_v49  ;;  %v230_v45 = vld [vmem:[%s1574_s1 + $0x5c0] sm:$0xff]  ;;  %v197_v47 = vld [vmem:[%s1574_s1 + $0x4b8] sm:$0xff]  ;;  %v212_v48 = vld [vmem:[%s1574_s1 + $0x530] sm:$0xff] }
  0x3c   :  { %478 = vmatpush.msrb.mxu3 %v162_v50  ;;  %322 = vmatmul.f32.vlgmr.msra.gmra.mxu0 %v14_v51  ;;  %v229_v49 = vld [vmem:[%s1574_s1 + $0x5b8] sm:$0xff]  ;;  %v179_v50 = vld [vmem:[%s1574_s1 + $0x428] sm:$0xff]  ;;  %v196_v51 = vld [vmem:[%s1574_s1 + $0x4b0] sm:$0xff] }
  0x3d   :  { %391 = vmatmul.f32.vlgmr.msra.gmra.mxu3 %v17_v52  ;;  %411 = vmatpush.msrb.mxu0 %v112_v53  ;;  %v211_v52 = vld [vmem:[%s1574_s1 + $0x528] sm:$0xff]  ;;  %v228_v53 = vld [vmem:[%s1574_s1 + $0x5b0] sm:$0xff] }
  0x3e   :  { %433 = vmatpush.msrb.mxu1 %v129_v54  ;;  %457 = vmatpush.msrb.mxu2 %v144_v55  ;;  %v178_v54 = vld [vmem:[%s1574_s1 + $0x420] sm:$0xff]  ;;  %v195_v55 = vld [vmem:[%s1574_s1 + $0x4a8] sm:$0xff] }
  0x3f   :  { %479 = vmatpush.msrb.mxu3 %v161_v56  ;;  %345 = vmatmul.f32.vlgmr.msra.gmra.mxu1 %v15_v57  ;;  %v210_v56 = vld [vmem:[%s1574_s1 + $0x520] sm:$0xff]  ;;  %v227_v57 = vld [vmem:[%s1574_s1 + $0x5a8] sm:$0xff] }
  0x40   :  { %412 = vmatpush.msrb.mxu0 %v111_v58  ;;  %434 = vmatpush.msrb.mxu1 %v128_v59  ;;  %v34_v58 = vld [vmem:[%s1575_s0 + $0xa0] sm:$0xff]  ;;  %v36_v59 = vld [vmem:[%s1575_s0 + $0xb0] sm:$0xff] }
  0x41   :  { %458 = vmatpush.msrb.mxu2 %v143_v60  ;;  %480 = vmatpush.msrb.mxu3 %v160_v61  ;;  %v177_v60 = vld [vmem:[%s1574_s1 + $0x418] sm:$0xff]  ;;  %v194_v61 = vld [vmem:[%s1574_s1 + $0x4a0] sm:$0xff] }
  0x42   :  { %413 = vmatpush.msrb.mxu0 %v110_v62  ;;  %435 = vmatpush.msrb.mxu1 %v127_v63  ;;  %v209_v62 = vld [vmem:[%s1574_s1 + $0x518] sm:$0xff]  ;;  %v226_v63 = vld [vmem:[%s1574_s1 + $0x5a0] sm:$0xff] }
  0x43   :  { %459 = vmatpush.msrb.mxu2 %v142_v0  ;;  %481 = vmatpush.msrb.mxu3 %v159_v1  ;;  %v35_v0 = vld [vmem:[%s1575_s0 + $0xa8] sm:$0xff]  ;;  %v37_v1 = vld [vmem:[%s1575_s0 + $0xb8] sm:$0xff] }
  0x44   :  { %371 = vmatmul.f32.gmra.mxu2 %v32_v2  ;;  %490 = vmatpush.msra.mxu0 %v189_v3  ;;  %v176_v2 = vld [vmem:[%s1574_s1 + $0x410] sm:$0xff]  ;;  %v193_v3 = vld [vmem:[%s1574_s1 + $0x498] sm:$0xff] }
  0x45   :  { %536 = vmatpush.msra.mxu2 %v221_v4  ;;  %436 = vmatpush.msrb.mxu1 %v126_v5  ;;  %v208_v4 = vld [vmem:[%s1574_s1 + $0x510] sm:$0xff]  ;;  %v225_v5 = vld [vmem:[%s1574_s1 + $0x598] sm:$0xff] }
  0x46   :  { %482 = vmatpush.msrb.mxu3 %v158_v6  ;;  %325 = vmatmul.f32.gmra.mxu0 %v30_v7  ;;  %v175_v6 = vld [vmem:[%s1574_s1 + $0x408] sm:$0xff]  ;;  %v192_v7 = vld [vmem:[%s1574_s1 + $0x490] sm:$0xff] }
  0x47   :  { %394 = vmatmul.f32.gmra.mxu3 %v33_v8  ;;  %491 = vmatpush.msra.mxu0 %v188_v9  ;;  %v207_v8 = vld [vmem:[%s1574_s1 + $0x508] sm:$0xff]  ;;  %v224_v9 = vld [vmem:[%s1574_s1 + $0x590] sm:$0xff] }
  0x48   :  { %513 = vmatpush.msra.mxu1 %v205_v10  ;;  %537 = vmatpush.msra.mxu2 %v220_v11  ;;  %v174_v10 = vld [vmem:[%s1574_s1 + $0x400] sm:$0xff]  ;;  %v191_v11 = vld [vmem:[%s1574_s1 + $0x488] sm:$0xff] }
  0x49   :  { %559 = vmatpush.msra.mxu3 %v237_v12  ;;  %348 = vmatmul.f32.gmra.mxu1 %v31_v13  ;;  %v206_v12 = vld [vmem:[%s1574_s1 + $0x500] sm:$0xff]  ;;  %v223_v13 = vld [vmem:[%s1574_s1 + $0x588] sm:$0xff] }
  0x4a   :  { %492 = vmatpush.msra.mxu0 %v187_v14  ;;  %514 = vmatpush.msra.mxu1 %v204_v15  ;;  %v22_v14 = vld [vmem:[%s1575_s0 + $0x40] sm:$0xff]  ;;  %v24_v15 = vld [vmem:[%s1575_s0 + $0x50] sm:$0xff] }
  0x4b   :  { %538 = vmatpush.msra.mxu2 %v219_v16  ;;  %560 = vmatpush.msra.mxu3 %v236_v17  ;;  %v253_v16 = vld [vmem:[%s1574_s1 + $0x678] sm:$0xff] }
  0x4c   :  { %493 = vmatpush.msra.mxu0 %v186_v18  ;;  %515 = vmatpush.msra.mxu1 %v203_v19  ;;  %v285_v17 = vld [vmem:[%s1574_s1 + $0x778] sm:$0xff]  ;;  %v190_v18 = vld [vmem:[%s1574_s1 + $0x480] sm:$0xff] }
  0x4d   :  { %539 = vmatpush.msra.mxu2 %v218_v20  ;;  %561 = vmatpush.msra.mxu3 %v235_v21  ;;  %v222_v19 = vld [vmem:[%s1574_s1 + $0x580] sm:$0xff]  ;;  %v23_v20 = vld [vmem:[%s1575_s0 + $0x48] sm:$0xff]  ;;  %v25_v21 = vld [vmem:[%s1575_s0 + $0x58] sm:$0xff] }
  0x4e   :  { %460 = vmatmul.f32.vlgmr.msrb.gmra.mxu2 %v20_v22  ;;  %494 = vmatpush.msra.mxu0 %v185_v23  ;;  %v252_v22 = vld [vmem:[%s1574_s1 + $0x670] sm:$0xff]  ;;  %v269_v23 = vld [vmem:[%s1574_s1 + $0x6f8] sm:$0xff] }
  0x4f   :  { %516 = vmatpush.msra.mxu1 %v202_v24  ;;  %540 = vmatpush.msra.mxu2 %v217_v25  ;;  %v284_v24 = vld [vmem:[%s1574_s1 + $0x770] sm:$0xff]  ;;  %v301_v25 = vld [vmem:[%s1574_s1 + $0x7f8] sm:$0xff] }
  0x50   :  { %562 = vmatpush.msra.mxu3 %v234_v26  ;;  %414 = vmatmul.f32.vlgmr.msrb.gmra.mxu0 %v18_v27  ;;  %v251_v26 = vld [vmem:[%s1574_s1 + $0x668] sm:$0xff]  ;;  %v268_v27 = vld [vmem:[%s1574_s1 + $0x6f0] sm:$0xff] }
  0x51   :  { %483 = vmatmul.f32.vlgmr.msrb.gmra.mxu3 %v21_v28  ;;  %495 = vmatpush.msra.mxu0 %v184_v29  ;;  %v283_v28 = vld [vmem:[%s1574_s1 + $0x768] sm:$0xff]  ;;  %v300_v29 = vld [vmem:[%s1574_s1 + $0x7f0] sm:$0xff] }
  0x52   :  { %517 = vmatpush.msra.mxu1 %v201_v30  ;;  %541 = vmatpush.msra.mxu2 %v216_v31  ;;  %v250_v30 = vld [vmem:[%s1574_s1 + $0x660] sm:$0xff]  ;;  %v267_v31 = vld [vmem:[%s1574_s1 + $0x6e8] sm:$0xff] }
  0x53   :  { %563 = vmatpush.msra.mxu3 %v233_v32  ;;  %437 = vmatmul.f32.vlgmr.msrb.gmra.mxu1 %v19_v33  ;;  %v282_v32 = vld [vmem:[%s1574_s1 + $0x760] sm:$0xff]  ;;  %v299_v33 = vld [vmem:[%s1574_s1 + $0x7e8] sm:$0xff] }
  0x54   :  { %496 = vmatpush.msra.mxu0 %v183_v34  ;;  %518 = vmatpush.msra.mxu1 %v200_v35  ;;  %v40_v34 = vld [vmem:[%s1575_s0 + $0xd0] sm:$0xff]  ;;  %v249_v35 = vld [vmem:[%s1574_s1 + $0x658] sm:$0xff] }
  0x55   :  { %542 = vmatpush.msra.mxu2 %v215_v36  ;;  %564 = vmatpush.msra.mxu3 %v232_v37  ;;  %v266_v36 = vld [vmem:[%s1574_s1 + $0x6e0] sm:$0xff]  ;;  %v281_v37 = vld [vmem:[%s1574_s1 + $0x758] sm:$0xff] }
  0x56   :  { %497 = vmatpush.msra.mxu0 %v182_v38  ;;  %519 = vmatpush.msra.mxu1 %v199_v39  ;;  %v298_v38 = vld [vmem:[%s1574_s1 + $0x7e0] sm:$0xff] }
  0x57   :  { %543 = vmatpush.msra.mxu2 %v214_v40  ;;  %565 = vmatpush.msra.mxu3 %v231_v41  ;;  %v38_v39 = vld [vmem:[%s1575_s0 + $0xc0] sm:$0xff]  ;;  %v41_v40 = vld [vmem:[%s1575_s0 + $0xd8] sm:$0xff]  ;;  %v248_v41 = vld [vmem:[%s1574_s1 + $0x650] sm:$0xff] }
  0x58   :  { %498 = vmatpush.msra.mxu0 %v181_v42  ;;  %520 = vmatpush.msra.mxu1 %v198_v43  ;;  %v265_v42 = vld [vmem:[%s1574_s1 + $0x6d8] sm:$0xff]  ;;  %v280_v43 = vld [vmem:[%s1574_s1 + $0x750] sm:$0xff] }
  0x59   :  { %544 = vmatpush.msra.mxu2 %v213_v44  ;;  %566 = vmatpush.msra.mxu3 %v230_v45  ;;  %v297_v44 = vld [vmem:[%s1574_s1 + $0x7d8] sm:$0xff]  ;;  %v39_v45 = vld [vmem:[%s1575_s0 + $0xc8] sm:$0xff] }
  0x5a   :  { %499 = vmatpush.msra.mxu0 %v180_v46  ;;  %521 = vmatpush.msra.mxu1 %v197_v47  ;;  %v247_v46 = vld [vmem:[%s1574_s1 + $0x648] sm:$0xff]  ;;  %v264_v47 = vld [vmem:[%s1574_s1 + $0x6d0] sm:$0xff] }
  0x5b   :  { %545 = vmatpush.msra.mxu2 %v212_v48  ;;  %567 = vmatpush.msra.mxu3 %v229_v49  ;;  %v279_v48 = vld [vmem:[%s1574_s1 + $0x748] sm:$0xff]  ;;  %v296_v49 = vld [vmem:[%s1574_s1 + $0x7d0] sm:$0xff] }
  0x5c   :  { %500 = vmatpush.msra.mxu0 %v179_v50  ;;  %522 = vmatpush.msra.mxu1 %v196_v51  ;;  %v246_v50 = vld [vmem:[%s1574_s1 + $0x640] sm:$0xff]  ;;  %v263_v51 = vld [vmem:[%s1574_s1 + $0x6c8] sm:$0xff] }
  0x5d   :  { %546 = vmatpush.msra.mxu2 %v211_v52  ;;  %568 = vmatpush.msra.mxu3 %v228_v53  ;;  %v278_v52 = vld [vmem:[%s1574_s1 + $0x740] sm:$0xff]  ;;  %v295_v53 = vld [vmem:[%s1574_s1 + $0x7c8] sm:$0xff] }
  0x5e   :  { %501 = vmatpush.msra.mxu0 %v178_v54  ;;  %523 = vmatpush.msra.mxu1 %v195_v55  ;;  %v245_v54 = vld [vmem:[%s1574_s1 + $0x638] sm:$0xff]  ;;  %v262_v55 = vld [vmem:[%s1574_s1 + $0x6c0] sm:$0xff] }
  0x5f   :  { %547 = vmatpush.msra.mxu2 %v210_v56  ;;  %569 = vmatpush.msra.mxu3 %v227_v57  ;;  %v277_v56 = vld [vmem:[%s1574_s1 + $0x738] sm:$0xff]  ;;  %v294_v57 = vld [vmem:[%s1574_s1 + $0x7c0] sm:$0xff] }
  0x60   :  { %417 = vmatmul.f32.gmra.mxu0 %v34_v58  ;;  %463 = vmatmul.f32.gmra.mxu2 %v36_v59  ;;  %v244_v58 = vld [vmem:[%s1574_s1 + $0x630] sm:$0xff]  ;;  %v261_v59 = vld [vmem:[%s1574_s1 + $0x6b8] sm:$0xff] }
  0x61   :  { %502 = vmatpush.msra.mxu0 %v177_v60  ;;  %524 = vmatpush.msra.mxu1 %v194_v61  ;;  %v276_v60 = vld [vmem:[%s1574_s1 + $0x730] sm:$0xff]  ;;  %v293_v61 = vld [vmem:[%s1574_s1 + $0x7b8] sm:$0xff] }
  0x62   :  { %548 = vmatpush.msra.mxu2 %v209_v62  ;;  %570 = vmatpush.msra.mxu3 %v226_v63  ;;  %v243_v62 = vld [vmem:[%s1574_s1 + $0x628] sm:$0xff]  ;;  %v260_v63 = vld [vmem:[%s1574_s1 + $0x6b0] sm:$0xff] }
  0x63   :  { %440 = vmatmul.f32.gmra.mxu1 %v35_v0  ;;  %486 = vmatmul.f32.gmra.mxu3 %v37_v1  ;;  %v275_v0 = vld [vmem:[%s1574_s1 + $0x728] sm:$0xff]  ;;  %v292_v1 = vld [vmem:[%s1574_s1 + $0x7b0] sm:$0xff] }
  0x64   :  { %503 = vmatpush.msra.mxu0 %v176_v2  ;;  %525 = vmatpush.msra.mxu1 %v193_v3  ;;  %v242_v2 = vld [vmem:[%s1574_s1 + $0x620] sm:$0xff]  ;;  %v259_v3 = vld [vmem:[%s1574_s1 + $0x6a8] sm:$0xff] }
  0x65   :  { %549 = vmatpush.msra.mxu2 %v208_v4  ;;  %571 = vmatpush.msra.mxu3 %v225_v5  ;;  %v274_v4 = vld [vmem:[%s1574_s1 + $0x720] sm:$0xff]  ;;  %v291_v5 = vld [vmem:[%s1574_s1 + $0x7a8] sm:$0xff] }
  0x66   :  { %504 = vmatpush.msra.mxu0 %v175_v6  ;;  %526 = vmatpush.msra.mxu1 %v192_v7  ;;  %v241_v6 = vld [vmem:[%s1574_s1 + $0x618] sm:$0xff]  ;;  %v258_v7 = vld [vmem:[%s1574_s1 + $0x6a0] sm:$0xff] }
  0x67   :  { %550 = vmatpush.msra.mxu2 %v207_v8  ;;  %572 = vmatpush.msra.mxu3 %v224_v9  ;;  %v273_v8 = vld [vmem:[%s1574_s1 + $0x718] sm:$0xff]  ;;  %v290_v9 = vld [vmem:[%s1574_s1 + $0x7a0] sm:$0xff] }
  0x68   :  { %505 = vmatpush.msra.mxu0 %v174_v10  ;;  %527 = vmatpush.msra.mxu1 %v191_v11  ;;  %v240_v10 = vld [vmem:[%s1574_s1 + $0x610] sm:$0xff]  ;;  %v257_v11 = vld [vmem:[%s1574_s1 + $0x698] sm:$0xff] }
  0x69   :  { %551 = vmatpush.msra.mxu2 %v206_v12  ;;  %573 = vmatpush.msra.mxu3 %v223_v13  ;;  %v272_v12 = vld [vmem:[%s1574_s1 + $0x710] sm:$0xff]  ;;  %v289_v13 = vld [vmem:[%s1574_s1 + $0x798] sm:$0xff] }
  0x6a   :  { %506 = vmatmul.f32.vlgmr.msra.gmra.mxu0 %v22_v14  ;;  %552 = vmatmul.f32.vlgmr.msra.gmra.mxu2 %v24_v15  ;;  %v239_v14 = vld [vmem:[%s1574_s1 + $0x608] sm:$0xff]  ;;  %v256_v15 = vld [vmem:[%s1574_s1 + $0x690] sm:$0xff] }
  0x6b   :  { %582 = vmatpush.msrb.mxu0 %v253_v16  ;;  %628 = vmatpush.msrb.mxu2 %v285_v17  ;;  %v271_v16 = vld [vmem:[%s1574_s1 + $0x708] sm:$0xff]  ;;  %v288_v17 = vld [vmem:[%s1574_s1 + $0x790] sm:$0xff] }
  0x6c   :  { %528 = vmatpush.msra.mxu1 %v190_v18  ;;  %574 = vmatpush.msra.mxu3 %v222_v19  ;;  %v238_v18 = vld [vmem:[%s1574_s1 + $0x600] sm:$0xff]  ;;  %v255_v19 = vld [vmem:[%s1574_s1 + $0x688] sm:$0xff] }
  0x6d   :  { %529 = vmatmul.f32.vlgmr.msra.gmra.mxu1 %v23_v20  ;;  %575 = vmatmul.f32.vlgmr.msra.gmra.mxu3 %v25_v21  ;;  %v270_v20 = vld [vmem:[%s1574_s1 + $0x700] sm:$0xff]  ;;  %v287_v21 = vld [vmem:[%s1574_s1 + $0x788] sm:$0xff] }
  0x6e   :  { %583 = vmatpush.msrb.mxu0 %v252_v22  ;;  %605 = vmatpush.msrb.mxu1 %v269_v23  ;;  %v26_v22 = vld [vmem:[%s1575_s0 + $0x60] sm:$0xff]  ;;  %v28_v23 = vld [vmem:[%s1575_s0 + $0x70] sm:$0xff] }
  0x6f   :  { %629 = vmatpush.msrb.mxu2 %v284_v24  ;;  %651 = vmatpush.msrb.mxu3 %v301_v25  ;;  %v254_v24 = vld [vmem:[%s1574_s1 + $0x680] sm:$0xff] }
  0x70   :  { %584 = vmatpush.msrb.mxu0 %v251_v26  ;;  %606 = vmatpush.msrb.mxu1 %v268_v27  ;;  %v286_v25 = vld [vmem:[%s1574_s1 + $0x780] sm:$0xff]  ;;  %v27_v26 = vld [vmem:[%s1575_s0 + $0x68] sm:$0xff]  ;;  %v29_v27 = vld [vmem:[%s1575_s0 + $0x78] sm:$0xff] }
  0x71   :  { %630 = vmatpush.msrb.mxu2 %v283_v28  ;;  %652 = vmatpush.msrb.mxu3 %v300_v29  ;;  %v42_v28 = vld [vmem:[%s1575_s0 + $0xe0] sm:$0xff]  ;;  %v44_v29 = vld [vmem:[%s1575_s0 + $0xf0] sm:$0xff] }
  0x72   :  { %585 = vmatpush.msrb.mxu0 %v250_v30  ;;  %607 = vmatpush.msrb.mxu1 %v267_v31  ;;  %v43_v30 = vld [vmem:[%s1575_s0 + $0xe8] sm:$0xff]  ;;  %v45_v31 = vld [vmem:[%s1575_s0 + $0xf8] sm:$0xff] }
  0x73   :  { %631 = vmatpush.msrb.mxu2 %v282_v32  ;;  %653 = vmatpush.msrb.mxu3 %v299_v33 }
  0x74   :  { %555 = vmatmul.f32.gmra.mxu2 %v40_v34  ;;  %586 = vmatpush.msrb.mxu0 %v249_v35 }
  0x75   :  { %608 = vmatpush.msrb.mxu1 %v266_v36  ;;  %632 = vmatpush.msrb.mxu2 %v281_v37  ;;  %v680_v37 = vld [vmem:[%s1576_s2] ss:$0 sm:$0xff] }
  0x76   :  { %654 = vmatpush.msrb.mxu3 %v298_v38  ;;  %509 = vmatmul.f32.gmra.mxu0 %v38_v39 }
  0x77   :  { %578 = vmatmul.f32.gmra.mxu3 %v41_v40  ;;  %587 = vmatpush.msrb.mxu0 %v248_v41 }
  0x78   :  { %609 = vmatpush.msrb.mxu1 %v265_v42  ;;  %633 = vmatpush.msrb.mxu2 %v280_v43 }
  0x79   :  { %655 = vmatpush.msrb.mxu3 %v297_v44  ;;  %532 = vmatmul.f32.gmra.mxu1 %v39_v45 }
  0x7a   :  { %588 = vmatpush.msrb.mxu0 %v247_v46  ;;  %610 = vmatpush.msrb.mxu1 %v264_v47 }
  0x7b   :  { %634 = vmatpush.msrb.mxu2 %v279_v48  ;;  %656 = vmatpush.msrb.mxu3 %v296_v49 }
  0x7c   :  { %589 = vmatpush.msrb.mxu0 %v246_v50  ;;  %611 = vmatpush.msrb.mxu1 %v263_v51 }
  0x7d   :  { %635 = vmatpush.msrb.mxu2 %v278_v52  ;;  %657 = vmatpush.msrb.mxu3 %v295_v53 }
  0x7e   :  { %590 = vmatpush.msrb.mxu0 %v245_v54  ;;  %612 = vmatpush.msrb.mxu1 %v262_v55 }
  0x7f   :  { %636 = vmatpush.msrb.mxu2 %v277_v56  ;;  %658 = vmatpush.msrb.mxu3 %v294_v57 }
  0x80   :  { %591 = vmatpush.msrb.mxu0 %v244_v58  ;;  %613 = vmatpush.msrb.mxu1 %v261_v59 }
  0x81   :  { %637 = vmatpush.msrb.mxu2 %v276_v60  ;;  %659 = vmatpush.msrb.mxu3 %v293_v61 }
  0x82   :  { %592 = vmatpush.msrb.mxu0 %v243_v62  ;;  %614 = vmatpush.msrb.mxu1 %v260_v63 }
  0x83   :  { %638 = vmatpush.msrb.mxu2 %v275_v0  ;;  %660 = vmatpush.msrb.mxu3 %v292_v1 }
  0x84   :  { %593 = vmatpush.msrb.mxu0 %v242_v2  ;;  %615 = vmatpush.msrb.mxu1 %v259_v3 }
  0x85   :  { %639 = vmatpush.msrb.mxu2 %v274_v4  ;;  %661 = vmatpush.msrb.mxu3 %v291_v5 }
  0x86   :  { %594 = vmatpush.msrb.mxu0 %v241_v6  ;;  %616 = vmatpush.msrb.mxu1 %v258_v7 }
  0x87   :  { %640 = vmatpush.msrb.mxu2 %v273_v8  ;;  %662 = vmatpush.msrb.mxu3 %v290_v9 }
  0x88   :  { %595 = vmatpush.msrb.mxu0 %v240_v10  ;;  %617 = vmatpush.msrb.mxu1 %v257_v11 }
  0x89   :  { %641 = vmatpush.msrb.mxu2 %v272_v12  ;;  %663 = vmatpush.msrb.mxu3 %v289_v13 }
  0x8a   :  { %596 = vmatpush.msrb.mxu0 %v239_v14  ;;  %618 = vmatpush.msrb.mxu1 %v256_v15 }
  0x8b   :  { %642 = vmatpush.msrb.mxu2 %v271_v16  ;;  %664 = vmatpush.msrb.mxu3 %v288_v17 }
  0x8c   :  { %597 = vmatpush.msrb.mxu0 %v238_v18  ;;  %619 = vmatpush.msrb.mxu1 %v255_v19 }
  0x8d   :  { %643 = vmatpush.msrb.mxu2 %v270_v20  ;;  %665 = vmatpush.msrb.mxu3 %v287_v21 }
  0x8e   :  { %598 = vmatmul.f32.vlgmr.msrb.gmra.mxu0 %v26_v22  ;;  %644 = vmatmul.f32.vlgmr.msrb.gmra.mxu2 %v28_v23 }
  0x8f   :  { %620 = vmatpush.msrb.mxu1 %v254_v24  ;;  %666 = vmatpush.msrb.mxu3 %v286_v25 }
  0x90   :  { %621 = vmatmul.f32.vlgmr.msrb.gmra.mxu1 %v27_v26  ;;  %667 = vmatmul.f32.vlgmr.msrb.gmra.mxu3 %v29_v27 }
  0x96   :  { %601 = vmatmul.f32.gmra.mxu0 %v42_v28  ;;  %647 = vmatmul.f32.gmra.mxu2 %v44_v29 }
  0x98   :  { %624 = vmatmul.f32.gmra.mxu1 %v43_v30  ;;  %670 = vmatmul.f32.gmra.mxu3 %v45_v31 }
  0xb9   :  { %v323_v32 = vpop.f32.mrf.mxu0 }
  0xba   :  { %v324_v39 = vadd.f32 %v680_v37, %v323_v32 }
  0xbc   :  { %v346_v33 = vpop.f32.mrf.mxu1 }
  0xbd   :  { %v369_v34 = vpop.f32.mrf.mxu2  ;;  %v347_v42 = vadd.f32 %v346_v33, %v324_v39 }
  0xbf   :  { %v370_v46 = vadd.f32 %v369_v34, %v347_v42 }
  0xc0   :  { %v392_v35 = vpop.f32.mrf.mxu3 }
  0xc1   :  { %v393_v49 = vadd.f32 %v392_v35, %v370_v46 }
  0xc3   :  { %v326_v36 = vpop.f32.mrf.mxu0 }
  0xc4   :  { %v327_v43 = vadd.f32 %v680_v37, %v326_v36 }
  0xc6   :  { %v349_v38 = vpop.f32.mrf.mxu1 }
  0xc7   :  { %v372_v40 = vpop.f32.mrf.mxu2  ;;  %v350_v47 = vadd.f32 %v349_v38, %v327_v43 }
  0xc9   :  { %v373_v50 = vadd.f32 %v372_v40, %v350_v47 }
  0xca   :  { %v395_v41 = vpop.f32.mrf.mxu3 }
  0xcb   :  { %v396_v54 = vadd.f32 %v395_v41, %v373_v50 }
  0xcd   :  { %v415_v44 = vpop.f32.mrf.mxu0 }
  0xce   :  { %v416_v55 = vadd.f32 %v415_v44, %v393_v49 }
  0xd0   :  { %v438_v45 = vpop.f32.mrf.mxu1 }
  0xd1   :  { %v461_v48 = vpop.f32.mrf.mxu2  ;;  %v439_v57 = vadd.f32 %v438_v45, %v416_v55 }
  0xd3   :  { %v462_v61 = vadd.f32 %v461_v48, %v439_v57 }
  0xd4   :  { %v484_v51 = vpop.f32.mrf.mxu3 }
  0xd5   :  { %v485_v0 = vadd.f32 %v484_v51, %v462_v61 }
  0xdd   :  { %v418_v52 = vpop.f32.mrf.mxu0 }
  0xde   :  { %v419_v58 = vadd.f32 %v418_v52, %v396_v54 }
  0xe0   :  { %v441_v53 = vpop.f32.mrf.mxu1 }
  0xe1   :  { %v442_v62 = vadd.f32 %v441_v53, %v419_v58 }
  0xe3   :  { %v464_v56 = vpop.f32.mrf.mxu2 }
  0xe4   :  { %v465_v1 = vadd.f32 %v464_v56, %v442_v62 }
  0xe6   :  { %v487_v59 = vpop.f32.mrf.mxu3 }
  0xe7   :  { %v507_v60 = vpop.f32.mrf.mxu0  ;;  %v488_v5 = vadd.f32 %v487_v59, %v465_v1 }
  0xe8   :  { %v508_v3 = vadd.f32 %v507_v60, %v485_v0 }
  0xea   :  { %v530_v63 = vpop.f32.mrf.mxu1 }
  0xeb   :  { %v531_v7 = vadd.f32 %v530_v63, %v508_v3 }
  0xed   :  { %v553_v2 = vpop.f32.mrf.mxu2 }
  0xee   :  { %v554_v9 = vadd.f32 %v553_v2, %v531_v7 }
  0xf0   :  { %v576_v4 = vpop.f32.mrf.mxu3 }
  0xf1   :  { %v577_v12 = vadd.f32 %v576_v4, %v554_v9 }
  0xf3   :  { %v510_v6 = vpop.f32.mrf.mxu0 }
  0xf4   :  { %v511_v10 = vadd.f32 %v510_v6, %v488_v5 }
  0xf6   :  { %v533_v8 = vpop.f32.mrf.mxu1 }
  0xf7   :  { %v556_v11 = vpop.f32.mrf.mxu2  ;;  %v534_v13 = vadd.f32 %v533_v8, %v511_v10 }
  0xf9   :  { %v557_v18 = vadd.f32 %v556_v11, %v534_v13 }
  0xfa   :  { %v579_v14 = vpop.f32.mrf.mxu3 }
  0xfb   :  { %v580_v21 = vadd.f32 %v579_v14, %v557_v18 }
 0x10b   :  { %v599_v15 = vpop.f32.mrf.mxu0 }
 0x10c   :  { %v600_v16 = vadd.f32 %v599_v15, %v577_v12 }
 0x10d   :  { %v622_v17 = vpop.f32.mrf.mxu1 }
 0x10e   :  { %v623_v19 = vadd.f32 %v622_v17, %v600_v16 }
 0x111   :  { %v645_v20 = vpop.f32.mrf.mxu2 }
 0x112   :  { %v646_v22 = vadd.f32 %v645_v20, %v623_v19 }
 0x113   :  { %v602_v23 = vpop.f32.mrf.mxu0  ;;  %v668_v24 = vpop.f32.mrf.mxu3 }
 0x114   :  { %v603_v25 = vadd.f32 %v602_v23, %v580_v21  ;;  %v669_v26 = vadd.f32 %v668_v24, %v646_v22 }
 0x115   :  { %v625_v27 = vpop.f32.mrf.mxu1 }
 0x116   :  { %674 = vst [vmem:[%s1577_s3] sm:$0xff] %v669_v26  ;;  %v626_v28 = vadd.f32 %v625_v27, %v603_v25 }
 0x119   :  { %v648_v29 = vpop.f32.mrf.mxu2 }
 0x11a   :  { %v649_v30 = vadd.f32 %v648_v29, %v626_v28 }
 0x11b   :  { %v671_v31 = vpop.f32.mrf.mxu3 }
 0x11c   :  { %v672_v32 = vadd.f32 %v671_v31, %v649_v30 }
 0x11e   :  { %675 = vst [vmem:[%s1577_s3 + $0x8] sm:$0xff] %v672_v32 }

</bundles_post_ra>
